<compile_context>
chip_gen: v7x
topology: tpu7x:2x2x1
jax: 0.10.0
libtpu: 0.0.40
codegen_flags: <defaults>
</compile_context>

<pallas_src>
import jax
import jax.numpy as jnp
from jax import lax
from jax.experimental import pallas as pl
from jax.experimental.pallas import tpu as pltpu


def _round_up(x, m):
    return ((x + m - 1) // m) * m


def _cdiv(a, b):
    return (a + b - 1) // b


def skipgram_kernel(ids_ref, emb_ref, w_ref, b_ref, out_ref):
    """One batch tile: gather -> sigmoid -> linear -> log-softmax.

    ids_ref : (tile_b, 1) int32  VMEM (pipelined per grid step)
    emb_ref : (V, E)      f32    VMEM (resident, single-buffered)
    w_ref   : (E, V)      bf16   VMEM (resident, single-buffered)
    b_ref   : (1, V)      f32    VMEM (resident, single-buffered)
    out_ref : (tile_b, V) f32
    """
    tile_b = out_ref.shape[0]
    V, E = emb_ref.shape

    # --- embedding gather via one-hot matmul on the MXU --------------------
    # Replaces the previous per-row DMA gather (2*tile_b serialized descriptor
    # issues + waits per tile, zero overlap with compute).  The one-hot matrix
    # contains only 0.0 / 1.0, so selecting rows in f32 is exact.
    ids = ids_ref[...]                                            # (tile_b, 1)
    vocab_iota = lax.broadcasted_iota(jnp.int32, (tile_b, V), 1)  # (tile_b, V)
    one_hot = (vocab_iota == ids).astype(jnp.float32)
    emb = jnp.dot(one_hot, emb_ref[...],
                  preferred_element_type=jnp.float32)             # (tile_b, E)

    # --- sigmoid (f32 on VPU/EUP; v5e has no bf16 elementwise path) --------
    s = jax.nn.sigmoid(emb)

    # --- linear (MXU, bf16 operands, f32 accumulation) ----------------------
    logits = jnp.dot(s.astype(jnp.bfloat16), w_ref[...],
                     preferred_element_type=jnp.float32) + b_ref[...]

    # --- numerically-stable log-softmax over the vocab (lane) axis ----------
    # TODO(synk): for production vocabularies where (E, V) / the (tile_b, V)
    # output tile no longer fit VMEM (esp. v7x's 64 MiB), add a vocab grid axis
    # ("arbitrary", last in grid) with W spec (E, tile_v), running max / sum-exp
    # scratch, and finalize (z - lse) under pl.when on the last vocab step.
    m = jnp.max(logits, axis=-1, keepdims=True)
    z = logits - m
    lse = jnp.log(jnp.sum(jnp.exp(z), axis=-1, keepdims=True))
    out_ref[...] = (z - lse).astype(out_ref.dtype)


def skipgram_forward(x, emb_table, W, b, *, max_tile_b=256):
    """x: (B,) or (B, 1) int token ids.  W: (E, V).  b: (V,).  Returns (B, V) log-probs."""
    ids = jnp.squeeze(jnp.asarray(x)).astype(jnp.int32)       # matches torch .squeeze()
    if ids.ndim == 0:
        ids = ids[None]
    B = ids.shape[0]
    V, E = emb_table.shape
    assert W.shape == (E, V) and b.shape == (V,)

    # Batch tiling: minimize padding, keep >= 2 grid steps (v7x megacore) when B
    # permits, cap the tile at 256 (v6e/v7x MXU M dim), multiple of 8.
    if B <= 8:
        num_tiles = 1
    else:
        num_tiles = max(2, _cdiv(B, max_tile_b))
    tile_b = _round_up(_cdiv(B, num_tiles), 8)
    B_pad = tile_b * num_tiles
    if B_pad != B:
        # Padded rows gather token 0; their outputs are sliced off below.
        ids = jnp.pad(ids, (0, B_pad - B))
    ids2d = ids.reshape(B_pad, 1)

    emb_f32 = emb_table.astype(jnp.float32)
    W_bf16 = W.astype(jnp.bfloat16)            # MXU-native on v6e/v7x, half the DMA/VMEM
    b2d = b.reshape(1, V).astype(jnp.float32)

    grid = (num_tiles,)

    # VMEM budget: resident table + W + bias, double-buffered ids / out tiles,
    # plus elementwise temporaries (one-hot, logits, gathered rows).
    vmem_need = (V * E * 4                     # embedding table (f32, resident)
                 + E * V * 2                   # W (bf16, resident)
                 + V * 4                       # bias
                 + 2 * tile_b * 4              # ids tile (double-buffered)
                 + 2 * tile_b * V * 4          # out tile (double-buffered)
                 + 2 * tile_b * V * 4          # one-hot + logits temporaries
                 + tile_b * E * 4)             # gathered embeddings
    # Cap at 48 MiB: leaves headroom vs v7x's 64 MiB physical VMEM.
    vmem_limit = int(min(max(2 * vmem_need, 32 * 1024 * 1024), 48 * 1024 * 1024))

    cost = pl.CostEstimate(
        flops=4 * B_pad * E * V,                              # one-hot gather + linear
        transcendentals=B_pad * (2 * E + V),                  # sigmoid (exp+recip) + softmax exp
        bytes_accessed=(B_pad * 4 + V * E * 4 + E * V * 2 + V * 4 + B_pad * V * 4),
    )

    out = pl.pallas_call(
        skipgram_kernel,
        out_shape=jax.ShapeDtypeStruct((B_pad, V), jnp.float32),
        grid_spec=pltpu.PrefetchScalarGridSpec(
            num_scalar_prefetch=0,
            grid=grid,
            in_specs=[
                pl.BlockSpec((tile_b, 1), lambda i: (i, 0)),          # token ids per tile
                pl.BlockSpec((V, E), lambda i: (0, 0),
                             pipeline_mode=pl.Buffered(1)),           # resident emb table
                pl.BlockSpec((E, V), lambda i: (0, 0),
                             pipeline_mode=pl.Buffered(1)),           # resident W
                pl.BlockSpec((1, V), lambda i: (0, 0),
                             pipeline_mode=pl.Buffered(1)),           # bias row
            ],
            out_specs=pl.BlockSpec((tile_b, V), lambda i: (i, 0)),
        ),
        compiler_params=pltpu.CompilerParams(
            dimension_semantics=("parallel",),
            vmem_limit_bytes=vmem_limit,
        ),
        cost_estimate=cost,
    )(ids2d, emb_f32, W_bf16, b2d)
    return out[:B]


if __name__ == "__main__":
    vocab_size = 512
    embed_size = 128
    batch = 200            # not a multiple of the tile -> exercises the padding path

    key = jax.random.PRNGKey(0)
    k_emb, k_w, k_b, k_x = jax.random.split(key, 4)

    # Deterministic synthetic parameters (shapes match nn.Embedding / nn.Linear).
    emb_table = jax.random.normal(k_emb, (vocab_size, embed_size), jnp.float32)
    W_linear = jax.random.normal(k_w, (vocab_size, embed_size), jnp.float32) * 0.05
    b_linear = jax.random.normal(k_b, (vocab_size,), jnp.float32) * 0.05
    W = W_linear.T                                            # (E, V) kernel layout

    # Example input: (B, 1) token ids, like a center-word batch.
    x = jax.random.randint(k_x, (batch, 1), 0, vocab_size, jnp.int32)

    out = skipgram_forward(x, emb_table, W, b_linear)
    out = jax.block_until_ready(out)

    # Pure-JAX f32 reference (original module math).
    ids = jnp.squeeze(x)
    emb_g = jnp.take(emb_table, ids, axis=0)
    logits_ref = jax.nn.sigmoid(emb_g) @ W + b_linear
    ref = jax.nn.log_softmax(logits_ref, axis=-1)

    assert out.shape == (batch, vocab_size)
    # bf16 matmul operands (f32 accumulation) -> slightly loose tolerance vs f32 ref.
    assert jnp.allclose(out, ref, atol=3e-2, rtol=1e-3), float(jnp.max(jnp.abs(out - ref)))
    # log-softmax rows must exponentiate to 1.
    assert jnp.allclose(jnp.sum(jnp.exp(out), axis=-1), 1.0, atol=1e-3)

    print("KERNEL_OK")
</pallas_src>

<mosaic_0001>
module attributes {stable_mosaic.version = 11 : i64} {
  func.func @skipgram_kernel(%arg0: i32, %arg1: memref<104x1xi32, #tpu.memory_space<vmem>>, %arg2: memref<512x128xf32, #tpu.memory_space<vmem>>, %arg3: memref<128x512xbf16, #tpu.memory_space<vmem>>, %arg4: memref<1x512xf32, #tpu.memory_space<vmem>>, %arg5: memref<104x512xf32, #tpu.memory_space<vmem>>) attributes {dimension_semantics = [#tpu.dimension_semantics<parallel>], iteration_bounds = array<i64: 2>, scalar_prefetch = 0 : i64, scratch_operands = 0 : i64, tpu.core_type = #tpu.core_type<tc>, window_params = [{transform_indices = @transform_0, window_bounds = array<i64: 104, 1>}, {pipeline_mode = #tpu.pipeline_mode<synchronous>, transform_indices = @transform_1, window_bounds = array<i64: 512, 128>}, {pipeline_mode = #tpu.pipeline_mode<synchronous>, transform_indices = @transform_2, window_bounds = array<i64: 128, 512>}, {pipeline_mode = #tpu.pipeline_mode<synchronous>, transform_indices = @transform_3, window_bounds = array<i64: 1, 512>}, {transform_indices = @transform_4, window_bounds = array<i64: 104, 512>}]} {
    %c0 = arith.constant 0 : index
    %c0_0 = arith.constant 0 : index
    %0 = vector.load %arg1[%c0, %c0_0] : memref<104x1xi32, #tpu.memory_space<vmem>>, vector<104x1xi32>
    %1 = tpu.iota {dimensions = array<i32: 1>} : vector<104x512xi32>
    %2 = vector.broadcast %0 : vector<104x1xi32> to vector<104x512xi32>
    %3 = arith.cmpi eq, %1, %2 : vector<104x512xi32>
    %4 = arith.extui %3 : vector<104x512xi1> to vector<104x512xi32>
    %5 = arith.sitofp %4 : vector<104x512xi32> to vector<104x512xf32>
    %c0_1 = arith.constant 0 : index
    %c0_2 = arith.constant 0 : index
    %6 = vector.load %arg2[%c0_1, %c0_2] : memref<512x128xf32, #tpu.memory_space<vmem>>, vector<512x128xf32>
    %cst = arith.constant dense<0.000000e+00> : vector<104x128xf32>
    %7 = tpu.matmul %5, %6, %cst {dimension_numbers = #tpu.dot_dimension_numbers<[1], [0], [0], [1], [0, 0, 1, 1], [], []>} : vector<104x512xf32>, vector<512x128xf32>, vector<104x128xf32> -> vector<104x128xf32>
    %8 = arith.negf %7 : vector<104x128xf32>
    %9 = math.exp %8 : vector<104x128xf32>
    %cst_3 = arith.constant 1.000000e+00 : f32
    %10 = vector.broadcast %cst_3 : f32 to vector<104x128xf32>
    %11 = arith.addf %10, %9 : vector<104x128xf32>
    %12 = arith.divf %10, %11 : vector<104x128xf32>
    %13 = arith.truncf %12 : vector<104x128xf32> to vector<104x128xbf16>
    %c0_4 = arith.constant 0 : index
    %c0_5 = arith.constant 0 : index
    %14 = vector.load %arg3[%c0_4, %c0_5] : memref<128x512xbf16, #tpu.memory_space<vmem>>, vector<128x512xbf16>
    %cst_6 = arith.constant dense<0.000000e+00> : vector<104x512xf32>
    %15 = tpu.matmul %13, %14, %cst_6 {dimension_numbers = #tpu.dot_dimension_numbers<[1], [0], [0], [1], [0, 0, 1, 1], [], []>} : vector<104x128xbf16>, vector<128x512xbf16>, vector<104x512xf32> -> vector<104x512xf32>
    %c0_7 = arith.constant 0 : index
    %c0_8 = arith.constant 0 : index
    %16 = vector.load %arg4[%c0_7, %c0_8] : memref<1x512xf32, #tpu.memory_space<vmem>>, vector<1x512xf32>
    %17 = vector.broadcast %16 : vector<1x512xf32> to vector<104x512xf32>
    %18 = arith.addf %15, %17 : vector<104x512xf32>
    %cst_9 = arith.constant dense<0xFF800000> : vector<104xf32>
    %19 = vector.multi_reduction <maximumf>, %18, %cst_9 [1] : vector<104x512xf32> to vector<104xf32>
    %20 = vector.shape_cast %19 : vector<104xf32> to vector<104x1xf32>
    %21 = vector.broadcast %20 : vector<104x1xf32> to vector<104x512xf32>
    %22 = arith.subf %18, %21 : vector<104x512xf32>
    %23 = math.exp %22 : vector<104x512xf32>
    %cst_10 = arith.constant dense<0.000000e+00> : vector<104xf32>
    %24 = vector.multi_reduction <add>, %23, %cst_10 [1] : vector<104x512xf32> to vector<104xf32>
    %25 = vector.shape_cast %24 : vector<104xf32> to vector<104x1xf32>
    %26 = math.log %25 : vector<104x1xf32>
    %27 = vector.broadcast %26 : vector<104x1xf32> to vector<104x512xf32>
    %28 = arith.subf %22, %27 : vector<104x512xf32>
    %c0_11 = arith.constant 0 : index
    %c0_12 = arith.constant 0 : index
    %29 = vector.load %arg5[%c0_11, %c0_12] : memref<104x512xf32, #tpu.memory_space<vmem>>, vector<104x512xf32>
    tpu.vector_store %arg5[%c0_11, %c0_12], %28 {strides = array<i32>} : memref<104x512xf32, #tpu.memory_space<vmem>>, vector<104x512xf32>,
    return
  }
  func.func @transform_0(%arg0: i32) -> (i32, i32) {
    %c0_i32 = arith.constant 0 : i32
    %c0_i32_0 = arith.constant 0 : i32
    return %arg0, %c0_i32 : i32, i32
  }
  func.func @transform_1(%arg0: i32) -> (i32, i32) {
    %c0_i32 = arith.constant 0 : i32
    %c0_i32_0 = arith.constant 0 : i32
    %c0_i32_1 = arith.constant 0 : i32
    return %c0_i32, %c0_i32_0 : i32, i32
  }
  func.func @transform_2(%arg0: i32) -> (i32, i32) {
    %c0_i32 = arith.constant 0 : i32
    %c0_i32_0 = arith.constant 0 : i32
    %c0_i32_1 = arith.constant 0 : i32
    return %c0_i32, %c0_i32_0 : i32, i32
  }
  func.func @transform_3(%arg0: i32) -> (i32, i32) {
    %c0_i32 = arith.constant 0 : i32
    %c0_i32_0 = arith.constant 0 : i32
    %c0_i32_1 = arith.constant 0 : i32
    return %c0_i32, %c0_i32_0 : i32, i32
  }
  func.func @transform_4(%arg0: i32) -> (i32, i32) {
    %c0_i32 = arith.constant 0 : i32
    %c0_i32_0 = arith.constant 0 : i32
    return %arg0, %c0_i32 : i32, i32
  }
}

</mosaic_0001>

<bundles_post_ra>
// kernel: tpu_custom_call.1
= control target key start
LH: loop header
LB: loop body
LE: loop exit
PB: predicated region body
PF: predicated region fallthrough
CT: control target
= control target key end

     0   :  { %9 = vsyncpa [#allocation3], 0  ;;  %s3479_s0 = inlined_call_operand.vmem [shape: s32[208,1], index: 0, kind: input, shape index: {}]   ;;  %s3480_s1 = inlined_call_operand.hbm [shape: f32[512,128], index: 1, kind: input, shape index: {}]   ;;  %s3481_s2 = inlined_call_operand.hbm [shape: bf16[128,512], index: 2, kind: input, shape index: {}]   ;;  %s3482_s3 = inlined_call_operand.vmem [shape: f32[1,512], index: 3, kind: input, shape index: {}]   ;;  %s3483_s4 = inlined_call_operand.hbm [shape: f32[208,512], index: 4, kind: output, shape index: {}]  }
   0x1   :  { %10 = vsyncpa [#allocation6], 0 }
   0x2   :  { %11 = vsyncpa [#allocation4], 0 }
   0x3   :  { %13 = vsyncpa [#allocation4 + $0x1], 0  ;;  %s2619_s15 = smov 0   ;;  %s2621_s16 = smov 0  }
   0x4   :  { %s2623_s17 = smov 0   ;;  %s2625_s18 = smov 0  }
   0x5 LB: > { %s2640_s19 = sadd.s32 4294967295, %s2581_s18   ;;  %s1783_s20 = sadd.s32 4294967294, %s2581_s18   ;;  %s2581_s18 = sphi %s2625_s18, %s3546_s18   ;;  %s2577_s17 = sphi %s2623_s17, %s3545_s17   ;;  %s2573_s16 = sphi %s2621_s16, %s3544_s16   ;;  %s2569_s15 = sphi %s2619_s15, %s3543_s15  }
   0x6   : > { %s2644_s21 = sadd.s32 1, %s2581_s18   ;;  %s115_s22 = sadd.s32 1, %s2577_s17 }
   0x7   : > { %s112_s23 = ssub.s32 %s2581_s18, %s2644_s21  ;;  %p125_p0 = scmp.ne.s32.totalorder %s2577_s17, %s2573_s16 }
   0x8   : > { %p113_p1 = scmp.eq.s32.totalorder %s112_s23, 0  ;;  %p126_p2 = scmp.eq.s32.totalorder %s2640_s19, 1 }
   0x9   : > { %p131_p3 = scmp.ne.s32.totalorder %s2573_s16, %s2569_s15  ;;  %p132_p4 = scmp.eq.s32.totalorder %s1783_s20, 1 }
   0xa   : > { %s2655_s24 = scalar_select %p113_p1, %s2577_s17, %s115_s22  }
   0xb   : > { %p2657_p5 = por %p126_p2, %p125_p0  ;;  %p2661_p6 = por %p132_p4, %p131_p3 }
   0xc   : > { %p1784_p7 = scmp.ge.s32.totalorder %s2581_s18, 1  ;;  %p139_p8 = scmp.lt.s32.totalorder %s2581_s18, 3 }
   0xd   : > { %s3502_s25 = scalar_select %p2657_p5, 1, 0 }
   0xe   : > { %s3503_s26 = scalar_select %p2661_p6, 1, 0 }
   0xf   : > { %p3484_p9 = scmp.eq.s32.totalorder %s2640_s19, 0  ;;  %p2668_p10 = pnand %p1784_p7, %p139_p8 }
  0x10   : > { %s2583_s28 = smov [#allocation2]   ;;  %s2584_s5 = smov [#allocation5]  }
  0x11   : > { %s3504_s27 = scalar_select %p2668_p10, 1, 0 }
  0x12   : > { %s151_s29 = sshll.u32 %s2583_s28, 4  ;;  %p2165_p11 = pneg %p2668_p10  ;;  %s152_s29 = int_to_ptr.vmem [resolvable:$true] %s151_s29 }
  0x13   : > { %s164_s6 = sshll.u32 %s2584_s5, 4  ;;  %s2455_s9 = scalar_lea.hbm %s3480_s1, 8192  ;;  %s2680_s6 = int_to_ptr.vmem [resolvable:$true] %s164_s6 }
  0x14   : > { %p2676_p12 = pnand %p3484_p9, %p2165_p11  ;;  %p2456_p13 = scmp.ne.s32.totalorder %s3480_s1, %s2455_s9 }
  0x15   : > { %p2462_p3 = scmp.lt.u32.totalorder %s2455_s9, %s3480_s1 }
  0x16   : > { %p2457_p0 = pneg %p2676_p12 }
  0x18   : > { %p2458_p1 = pnand %p2457_p0, %p2456_p13 }
  0x1a   : > { %p2459_p2 = pneg %p2458_p1 }
  0x1c   : > { %p2464_p4 = pnand %p2462_p3, %p2459_p2 }
  0x1e   : > { %2467 = shalt.err (!%p2464_p4)
}
  0x1f   : > { %s2468_s14 = scalar_lea.vmem %s152_s29, 8192  ;;  %p2476_p9 = scmp.lt.s32.totalorder %s152_s29, %s152_s29 }
  0x20   : > { %p2469_p7 = scmp.ne.s32.totalorder %s152_s29, %s2468_s14  ;;  %p2477_p6 = scmp.lt.s32.totalorder %s2468_s14, %s2468_s14 }
  0x22   : > { %p2471_p8 = pnand %p2469_p7, %p2457_p0  ;;  %p2478_p5 = por %p2477_p6, %p2476_p9 }
  0x24   : > { %p2472_p11 = pneg %p2471_p8 }
  0x26   : > { %p2479_p10 = pnand %p2478_p5, %p2472_p11 }
  0x28   : > { %2482 = shalt.err (!%p2479_p10)
}
  0x29   : > { %s2585_s20 = smov 128   ;;  %s2586_s22 = smov 8  }
  0x2a   : > { %2168 = dma.hbm_to_vmem [thread:$0]  (!%p2676_p12), %s3480_s1, 8192, %s152_s29, [#allocation3], %s2585_s20, %s2585_s20, %s2586_s22  }
  0x2b   : > { %s2483_s8 = scalar_lea.hbm %s3481_s2, 4096 }
  0x2c   : > { %p2484_p13 = scmp.ne.s32.totalorder %s3481_s2, %s2483_s8  ;;  %p2490_p9 = scmp.lt.u32.totalorder %s2483_s8, %s3481_s2 }
  0x2e   : > { %p2486_p5 = pnand %p2484_p13, %p2457_p0 }
  0x30   : > { %p2487_p6 = pneg %p2486_p5 }
  0x32   : > { %p2492_p10 = pnand %p2490_p9, %p2487_p6 }
  0x34   : > { %2495 = shalt.err (!%p2492_p10)
}
  0x35   : > { %s2496_s29 = scalar_lea.vmem %s2680_s6, 4096  ;;  %p2504_p4 = scmp.lt.s32.totalorder %s2680_s6, %s2680_s6 }
  0x36   : > { %p2497_p1 = scmp.ne.s32.totalorder %s2680_s6, %s2496_s29  ;;  %p2505_p7 = scmp.lt.s32.totalorder %s2496_s29, %s2496_s29 }
  0x38   : > { %p2499_p2 = pnand %p2497_p1, %p2457_p0  ;;  %p2506_p8 = por %p2505_p7, %p2504_p4 }
  0x3a   : > { %p2500_p3 = pneg %p2499_p2 }
  0x3c   : > { %p2507_p11 = pnand %p2506_p8, %p2500_p3 }
  0x3e   : > { %2510 = shalt.err (!%p2507_p11)
}
  0x3f   : > { %s2587_s13 = smov 256   ;;  %s2588_s14 = smov 16  }
  0x40   : > { %2171 = dma.hbm_to_vmem [thread:$0]  (!%p2676_p12), %s3481_s2, 4096, %s2680_s6, [#allocation6], %s2587_s13, %s2587_s13, %s2588_s14  }
  0x41   : > { %p3506_p13 = scmp.ne.s32.totalorder %s3504_s27, 0 }
  0x43   : > { %192 = sbr.rel (%p3506_p13) target bundleno = 1073 (0x431), region = 36 }
  0x4a   : > { %p3507_p0 = scmp.eq.s32.totalorder %s2640_s19, 0 }
  0x4c   : > { %2556 = dma.done.wait (%p3507_p0), [#allocation3], 8192   ;;  %p3508_p5 = pmov %p3507_p0 }
  0x4d   : > { %p3509_p6 = pmov %p3507_p0 }
  0x4e   : > { %2558 = vsyncadd (%p3508_p5), [#allocation3], 4294959104 }
  0x4f   : > { %2560 = dma.done.wait (%p3509_p6), [#allocation6], 4096   ;;  %p3510_p9 = pmov %p3507_p0 }
  0x50   : > { %s222_s30 = smul.u32 13, %s2640_s19  ;;  %v2589_v0 = vmov 0   ;;  %v459_v1 = vld [vmem:[#allocation2 + $0x80] sm:$0xff]  ;;  %v460_v2 = vld [vmem:[#allocation2 + $0x88] sm:$0xff]  ;;  %v461_v19 = vld [vmem:[#allocation2 + $0x90] sm:$0xff]  ;;  %s219_s8 = sand.u32 1, %s2573_s16  }
  0x51   : > { %2562 = vsyncadd (%p3510_p9), [#allocation6], 4294963200  ;;  %2224 = vset.pattern.permute.xlu1 %v2589_v0  ;;  %2223 = vset.pattern.permute.xlu0 %v2589_v0  ;;  %v2090_v5 = vpack.c.bf16 %v460_v2, %v459_v1  ;;  %v491_v8 = vld [vmem:[#allocation2 + $0x180] sm:$0xff]  ;;  %v492_v11 = vld [vmem:[#allocation2 + $0x188] sm:$0xff]  ;;  %s2154_s9 = smul.u32 416, %s219_s8  ;;  %s3438_s14 = scalar_lea.sflag [#allocation4], %s219_s8 }
  0x52   : > { %p223_p12 = scmp.lt.s32.totalorder %s222_s30, 25  ;;  %v443_v12 = vld [vmem:[#allocation2] sm:$0xff]  ;;  %v2122_v13 = vpack.c.bf16 %v492_v11, %v491_v8  ;;  %v444_v14 = vld [vmem:[#allocation2 + $0x8] sm:$0xff]  ;;  %v462_v20 = vld [vmem:[#allocation2 + $0x98] sm:$0xff]  ;;  %s1947_s11 = smul.u32 6656, %s2640_s19 }
  0x53   : > { %2091 = vmatprep.subr.bf16.mxu0 %v2090_v5  ;;  %v475_v15 = vld [vmem:[#allocation2 + $0x100] sm:$0xff]  ;;  %v476_v16 = vld [vmem:[#allocation2 + $0x108] sm:$0xff]  ;;  %v2092_v17 = vpack.c.bf16 %v444_v14, %v443_v12  ;;  %v493_v21 = vld [vmem:[#allocation2 + $0x190] sm:$0xff]  ;;  %v2094_v22 = vpack.c.bf16 %v462_v20, %v461_v19  ;;  %s3325_s10 = scalar_lea.vmem [#allocation7], %s2154_s9  ;;  %p3541_p1 = scmp.ne.s32.totalorder %s3502_s25, 0 }
  0x54   : > { %s3548_s30 = smov (!%p223_p12, %s222_s30), 25  ;;  %v2124_v18 = vpack.c.bf16 %v476_v16, %v475_v15  ;;  %2123 = vmatprep.subr.bf16.mxu1 %v2122_v13  ;;  %v494_v23 = vld [vmem:[#allocation2 + $0x198] sm:$0xff]  ;;  %v445_v24 = vld [vmem:[#allocation2 + $0x10] sm:$0xff]  ;;  %v463_v32 = vld [vmem:[#allocation2 + $0xa0] sm:$0xff]  ;;  %s1699_s12 = sshll.u32 %s3325_s10, 4  ;;  %s3430_s12 = int_to_ptr.vmem [resolvable:$true] %s1699_s12 }
  0x55   : > { %s1791_s27 = sshll.u32 %s3548_s30, 3  ;;  %v446_v25 = vld [vmem:[#allocation2 + $0x18] sm:$0xff]  ;;  %2093 = vmatpush3.bf16.msra.mxu0 %v2092_v17  ;;  %v2126_v28 = vpack.c.bf16 %v494_v23, %v493_v21  ;;  %v477_v30 = vld [vmem:[#allocation2 + $0x110] sm:$0xff]  ;;  %v464_v34 = vld [vmem:[#allocation2 + $0xa8] sm:$0xff]  ;;  %s3424_s13 = scalar_lea.hbm %s3483_s4, %s1947_s11 }
  0x56   : > { %s2745_s28 = scalar_lea.vmem %s3479_s0, %s1791_s27  ;;  %2125 = vmatpush3.bf16.msra.mxu1 %v2124_v18  ;;  %v2096_v29 = vpack.c.bf16 %v446_v25, %v445_v24  ;;  %v478_v31 = vld [vmem:[#allocation2 + $0x118] sm:$0xff]  ;;  %v495_v35 = vld [vmem:[#allocation2 + $0x1a0] sm:$0xff]  ;;  %v496_v36 = vld [vmem:[#allocation2 + $0x1a8] sm:$0xff]  ;;  %2095 = vmatprep.subr.bf16.mxu0 %v2094_v22  ;;  %v2098_v37 = vpack.c.bf16 %v464_v34, %v463_v32  ;;  %s2511_s20 = scalar_lea.vmem %s3430_s12, 6656 }
  0x57   : > { %v232_v3 = vld [vmem:[%s2745_s28 + $0x10] sm:$0xff]  ;;  %v230_v4 = vld [vmem:[%s2745_s28] sm:$0xff]  ;;  %v233_v6 = vld [vmem:[%s2745_s28 + $0x18] sm:$0xff]  ;;  %v2128_v33 = vpack.c.bf16 %v478_v31, %v477_v30  ;;  %2127 = vmatprep.subr.bf16.mxu1 %v2126_v28  ;;  %v2130_v38 = vpack.c.bf16 %v496_v36, %v495_v35  ;;  %p2512_p10 = scmp.ne.s32.totalorder %s3430_s12, %s2511_s20  ;;  %s2591_s22 = smov [#allocation7]  }
  0x58   : > { %255 = vperm.xlu1 %2224, %v232_v3   ;;  %249 = vperm.xlu0 %2223, %v230_v4   ;;  %v231_v7 = vld [vmem:[%s2745_s28 + $0x8] sm:$0xff]  ;;  %v234_v10 = vld [vmem:[%s2745_s28 + $0x20] sm:$0xff]  ;;  %v237_v26 = vld [vmem:[%s2745_s28 + $0x38] sm:$0xff]  ;;  %s2515_s30 = sshll.u32 %s2591_s22, 4  ;;  %s2516_s30 = int_to_ptr.vmem [resolvable:$false] %s2515_s30 }
  0x59   : > { %v235_v9 = vld [vmem:[%s2745_s28 + $0x28] sm:$0xff]  ;;  %v236_v27 = vld [vmem:[%s2745_s28 + $0x30] sm:$0xff]  ;;  %v447_v39 = vld [vmem:[#allocation2 + $0x20] sm:$0xff]  ;;  %2097 = vmatpush3.bf16.msra.mxu0 %v2096_v29  ;;  %p2513_p2 = pnand %p2512_p10, %p3541_p1  ;;  %s2517_s27 = scalar_lea.vmem %s2516_s30, 13312 }
  0x5a   : > { %v448_v40 = vld [vmem:[#allocation2 + $0x28] sm:$0xff]  ;;  %v479_v41 = vld [vmem:[#allocation2 + $0x120] sm:$0xff]  ;;  %v465_v43 = vld [vmem:[#allocation2 + $0xb0] sm:$0xff]  ;;  %2129 = vmatpush3.bf16.msra.mxu1 %v2128_v33  ;;  %2099 = vmatprep.subr.bf16.mxu0 %v2098_v37  ;;  %p2518_p4 = scmp.lt.s32.totalorder %s3430_s12, %s2516_s30  ;;  %p2519_p7 = scmp.lt.s32.totalorder %s2517_s27, %s2511_s20 }
  0x5b   : > { %v480_v42 = vld [vmem:[#allocation2 + $0x128] sm:$0xff]  ;;  %v466_v44 = vld [vmem:[#allocation2 + $0xb8] sm:$0xff]  ;;  %v2100_v45 = vpack.c.bf16 %v448_v40, %v447_v39  ;;  %v497_v47 = vld [vmem:[#allocation2 + $0x1b0] sm:$0xff]  ;;  %2131 = vmatprep.subr.bf16.mxu1 %v2130_v38  ;;  %p2514_p3 = pneg %p2513_p2 }
  0x5c   : > { %258 = vperm.xlu1 %2224, %v233_v6   ;;  %252 = vperm.xlu0 %2223, %v231_v7   ;;  %v2132_v46 = vpack.c.bf16 %v480_v42, %v479_v41  ;;  %v498_v48 = vld [vmem:[#allocation2 + $0x1b8] sm:$0xff]  ;;  %v449_v49 = vld [vmem:[#allocation2 + $0x30] sm:$0xff]  ;;  %v238_v54 = vld [vmem:[%s2745_s28 + $0x40] sm:$0xff]  ;;  %v2102_v55 = vpack.c.bf16 %v466_v44, %v465_v43  ;;  %p2520_p8 = por %p2519_p7, %p2518_p4 }
  0x5d   : > { %v450_v50 = vld [vmem:[#allocation2 + $0x38] sm:$0xff]  ;;  %v481_v51 = vld [vmem:[#allocation2 + $0x130] sm:$0xff]  ;;  %v2134_v56 = vpack.c.bf16 %v498_v48, %v497_v47  ;;  %v467_v57 = vld [vmem:[#allocation2 + $0xc0] sm:$0xff]  ;;  %2101 = vmatpush3.bf16.msra.mxu0 %v2100_v45 }
  0x5e   : > { %v482_v52 = vld [vmem:[#allocation2 + $0x138] sm:$0xff]  ;;  %v239_v53 = vld [vmem:[%s2745_s28 + $0x48] sm:$0xff]  ;;  %v468_v58 = vld [vmem:[#allocation2 + $0xc8] sm:$0xff]  ;;  %2133 = vmatpush3.bf16.msra.mxu1 %v2132_v46  ;;  %v2104_v62 = vpack.c.bf16 %v450_v50, %v449_v49  ;;  %2103 = vmatprep.subr.bf16.mxu0 %v2102_v55  ;;  %v243_v49 = vlaneseq  ;;  %p2521_p11 = pnand %p2520_p8, %p2514_p3 }
  0x5f   : > { %v499_v59 = vld [vmem:[#allocation2 + $0x1c0] sm:$0xff]  ;;  %v500_v60 = vld [vmem:[#allocation2 + $0x1c8] sm:$0xff]  ;;  %v2136_v63 = vpack.c.bf16 %v482_v52, %v481_v51  ;;  %v240_v5 = vld [vmem:[%s2745_s28 + $0x50] sm:$0xff]  ;;  %2135 = vmatprep.subr.bf16.mxu1 %v2134_v56  ;;  %v2106_v6 = vpack.c.bf16 %v468_v58, %v467_v57  ;;  %v2590_v58 = vmov 1.0  }
  0x60   : > { %264 = vperm.xlu1 %2224, %v235_v9   ;;  %261 = vperm.xlu0 %2223, %v234_v10   ;;  %v241_v61 = vld [vmem:[%s2745_s28 + $0x58] sm:$0xff]  ;;  %v452_v2 = vld [vmem:[#allocation2 + $0x48] sm:$0xff]  ;;  %v2138_v7 = vpack.c.bf16 %v500_v60, %v499_v59  ;;  %v469_v8 = vld [vmem:[#allocation2 + $0xd0] sm:$0xff]  ;;  %v2761_v50 = vand.u32 127, %v243_v49 }
  0x61   : > { %v451_v1 = vld [vmem:[#allocation2 + $0x40] sm:$0xff]  ;;  %v484_v4 = vld [vmem:[#allocation2 + $0x148] sm:$0xff]  ;;  %v470_v9 = vld [vmem:[#allocation2 + $0xd8] sm:$0xff]  ;;  %2105 = vmatpush3.bf16.msra.mxu0 %v2104_v62 }
  0x62   : > { %v483_v3 = vld [vmem:[#allocation2 + $0x140] sm:$0xff]  ;;  %v501_v10 = vld [vmem:[#allocation2 + $0x1d0] sm:$0xff]  ;;  %v502_v11 = vld [vmem:[#allocation2 + $0x1d8] sm:$0xff]  ;;  %2137 = vmatpush3.bf16.msra.mxu1 %v2136_v63  ;;  %v2108_v13 = vpack.c.bf16 %v452_v2, %v451_v1  ;;  %v2110_v17 = vpack.c.bf16 %v470_v9, %v469_v8  ;;  %2107 = vmatprep.subr.bf16.mxu0 %v2106_v6  ;;  %v2764_v51 = vadd.s32 128, %v2761_v50  ;;  %v2767_v52 = vadd.s32 384, %v2761_v50 }
  0x63   : > { %v242_v12 = vld [vmem:[%s2745_s28 + $0x60] sm:$0xff]  ;;  %v2140_v14 = vpack.c.bf16 %v484_v4, %v483_v3  ;;  %v453_v15 = vld [vmem:[#allocation2 + $0x50] sm:$0xff]  ;;  %v454_v16 = vld [vmem:[#allocation2 + $0x58] sm:$0xff]  ;;  %2139 = vmatprep.subr.bf16.mxu1 %v2138_v7  ;;  %v2142_v21 = vpack.c.bf16 %v502_v11, %v501_v10 }
  0x64   : > { %270 = vperm.xlu1 %2224, %v237_v26   ;;  %267 = vperm.xlu0 %2223, %v236_v27   ;;  %v485_v18 = vld [vmem:[#allocation2 + $0x150] sm:$0xff]  ;;  %v486_v19 = vld [vmem:[#allocation2 + $0x158] sm:$0xff]  ;;  %v471_v20 = vld [vmem:[#allocation2 + $0xe0] sm:$0xff]  ;;  %v2112_v29 = vpack.c.bf16 %v454_v16, %v453_v15 }
  0x65   : > { %v472_v22 = vld [vmem:[#allocation2 + $0xe8] sm:$0xff]  ;;  %v503_v23 = vld [vmem:[#allocation2 + $0x1e0] sm:$0xff]  ;;  %2109 = vmatpush3.bf16.msra.mxu0 %v2108_v13  ;;  %v2144_v30 = vpack.c.bf16 %v486_v19, %v485_v18  ;;  %v473_v31 = vld [vmem:[#allocation2 + $0xf0] sm:$0xff] }
  0x66   : > { %v504_v24 = vld [vmem:[#allocation2 + $0x1e8] sm:$0xff]  ;;  %v455_v25 = vld [vmem:[#allocation2 + $0x60] sm:$0xff]  ;;  %2141 = vmatpush3.bf16.msra.mxu1 %v2140_v14  ;;  %v474_v32 = vld [vmem:[#allocation2 + $0xf8] sm:$0xff]  ;;  %2111 = vmatprep.subr.bf16.mxu0 %v2110_v17  ;;  %v2114_v35 = vpack.c.bf16 %v472_v22, %v471_v20 }
  0x67   : > { %v456_v26 = vld [vmem:[#allocation2 + $0x68] sm:$0xff]  ;;  %v487_v27 = vld [vmem:[#allocation2 + $0x160] sm:$0xff]  ;;  %v505_v33 = vld [vmem:[#allocation2 + $0x1f0] sm:$0xff]  ;;  %v2146_v36 = vpack.c.bf16 %v504_v24, %v503_v23  ;;  %2143 = vmatprep.subr.bf16.mxu1 %v2142_v21  ;;  %v2118_v43 = vpack.c.bf16 %v474_v32, %v473_v31 }
  0x68   : > { %276 = vperm.xlu1 %2224, %v239_v53   ;;  %273 = vperm.xlu0 %2223, %v238_v54   ;;  %v488_v28 = vld [vmem:[#allocation2 + $0x168] sm:$0xff]  ;;  %v506_v34 = vld [vmem:[#allocation2 + $0x1f8] sm:$0xff]  ;;  %v457_v37 = vld [vmem:[#allocation2 + $0x70] sm:$0xff]  ;;  %v2116_v41 = vpack.c.bf16 %v456_v26, %v455_v25  ;;  %v2770_v53 = vadd.s32 256, %v2761_v50 }
  0x69   : > { %v458_v38 = vld [vmem:[#allocation2 + $0x78] sm:$0xff]  ;;  %v489_v39 = vld [vmem:[#allocation2 + $0x170] sm:$0xff]  ;;  %2113 = vmatpush3.bf16.msra.mxu0 %v2112_v29  ;;  %v2148_v42 = vpack.c.bf16 %v488_v28, %v487_v27  ;;  %v2150_v44 = vpack.c.bf16 %v506_v34, %v505_v33 }
  0x6a   : > { %v490_v40 = vld [vmem:[#allocation2 + $0x178] sm:$0xff]  ;;  %2145 = vmatpush3.bf16.msra.mxu1 %v2144_v30  ;;  %2115 = vmatprep.subr.bf16.mxu0 %v2114_v35  ;;  %v2120_v45 = vpack.c.bf16 %v458_v38, %v457_v37  ;;  %v2227_v47 = vld [vmem:[#allocation5 + $0x4] ss:$16 sps:$4 sm:$0xff]   ;;  %v2225_v55 = vld [vmem:[#allocation5] ss:$16 sps:$4 sm:$0xff]  }
  0x6b   : > { %2147 = vmatprep.subr.bf16.mxu1 %v2146_v36  ;;  %v2152_v46 = vpack.c.bf16 %v490_v40, %v489_v39  ;;  %v2230_v48 = vld [vmem:[#allocation5 + $0xc] ss:$16 sps:$4 sm:$0xff]   ;;  %v2228_v56 = vld [vmem:[#allocation5 + $0x8] ss:$16 sps:$4 sm:$0xff]   ;;  %v2233_v57 = vld [vmem:[#allocation5 + $0x24] ss:$16 sps:$4 sm:$0xff]  }
  0x6c   : > { %282 = vperm.xlu1 %2224, %v241_v61   ;;  %279 = vperm.xlu0 %2223, %v240_v5   ;;  %v2231_v61 = vld [vmem:[#allocation5 + $0x20] ss:$16 sps:$4 sm:$0xff]   ;;  %v2236_v62 = vld [vmem:[#allocation5 + $0x2c] ss:$16 sps:$4 sm:$0xff]   ;;  %v2234_v63 = vld [vmem:[#allocation5 + $0x28] ss:$16 sps:$4 sm:$0xff]  }
  0x6d   : > { %2117 = vmatpush3.bf16.msra.mxu0 %v2116_v41  ;;  %v2239_v2 = vld [vmem:[#allocation5 + $0x44] ss:$16 sps:$4 sm:$0xff]   ;;  %v2237_v4 = vld [vmem:[#allocation5 + $0x40] ss:$16 sps:$4 sm:$0xff]   ;;  %v2242_v13 = vld [vmem:[#allocation5 + $0x4c] ss:$16 sps:$4 sm:$0xff]  }
  0x6e   : > { %2149 = vmatpush3.bf16.msra.mxu1 %v2148_v42  ;;  %2119 = vmatprep.subr.bf16.mxu0 %v2118_v43  ;;  %v2240_v14 = vld [vmem:[#allocation5 + $0x48] ss:$16 sps:$4 sm:$0xff]   ;;  %v2245_v15 = vld [vmem:[#allocation5 + $0x64] ss:$16 sps:$4 sm:$0xff]   ;;  %v2248_v16 = vld [vmem:[#allocation5 + $0x6c] ss:$16 sps:$4 sm:$0xff]  }
  0x6f   : > { %2151 = vmatprep.subr.bf16.mxu1 %v2150_v44  ;;  %v2243_v17 = vld [vmem:[#allocation5 + $0x60] ss:$16 sps:$4 sm:$0xff]   ;;  %v2246_v18 = vld [vmem:[#allocation5 + $0x68] ss:$16 sps:$4 sm:$0xff]   ;;  %v2251_v19 = vld [vmem:[#allocation5 + $0x84] ss:$16 sps:$4 sm:$0xff]  }
  0x70   : > { %285 = vperm.xlu0 %2223, %v242_v12   ;;  %v2254_v20 = vld [vmem:[#allocation5 + $0x8c] ss:$16 sps:$4 sm:$0xff]   ;;  %v2249_v21 = vld [vmem:[#allocation5 + $0x80] ss:$16 sps:$4 sm:$0xff]   ;;  %v2252_v22 = vld [vmem:[#allocation5 + $0x88] ss:$16 sps:$4 sm:$0xff]  }
  0x71   : > { %2121 = vmatpush3.bf16.msra.mxu0 %v2120_v45  ;;  %v2257_v23 = vld [vmem:[#allocation5 + $0xa4] ss:$16 sps:$4 sm:$0xff]   ;;  %v2260_v24 = vld [vmem:[#allocation5 + $0xac] ss:$16 sps:$4 sm:$0xff]   ;;  %v2255_v25 = vld [vmem:[#allocation5 + $0xa0] ss:$16 sps:$4 sm:$0xff]  }
  0x72   : > { %2153 = vmatpush3.bf16.msra.mxu1 %v2152_v46  ;;  %1066 = vmatprep.subr.bf16.mxu0 %v2227_v47  ;;  %v2258_v26 = vld [vmem:[#allocation5 + $0xa8] ss:$16 sps:$4 sm:$0xff]   ;;  %v2263_v27 = vld [vmem:[#allocation5 + $0xc4] ss:$16 sps:$4 sm:$0xff]   ;;  %v2266_v28 = vld [vmem:[#allocation5 + $0xcc] ss:$16 sps:$4 sm:$0xff]  }
  0x73   : > { %1167 = vmatprep.subr.bf16.mxu1 %v2230_v48  ;;  %v2261_v29 = vld [vmem:[#allocation5 + $0xc0] ss:$16 sps:$4 sm:$0xff]   ;;  %v2264_v30 = vld [vmem:[#allocation5 + $0xc8] ss:$16 sps:$4 sm:$0xff]   ;;  %v2269_v31 = vld [vmem:[#allocation5 + $0xe4] ss:$16 sps:$4 sm:$0xff]  }
  0x74   : > { %v2272_v32 = vld [vmem:[#allocation5 + $0xec] ss:$16 sps:$4 sm:$0xff]   ;;  %v2267_v33 = vld [vmem:[#allocation5 + $0xe0] ss:$16 sps:$4 sm:$0xff]   ;;  %v2270_v34 = vld [vmem:[#allocation5 + $0xe8] ss:$16 sps:$4 sm:$0xff]  }
  0xd7   : > { %v250_v54 = vpop.permute.xlu0 %249  ;;  %v256_v59 = vpop.permute.xlu1 %255 }
  0xd8   : > { %vm288_vm0 = vcmp.eq.s32.totalorder %v2764_v51, %v250_v54  ;;  %vm290_vm1 = vcmp.eq.s32.totalorder %v2767_v52, %v250_v54  ;;  %vm287_vm2 = vcmp.eq.s32.totalorder %v2761_v50, %v250_v54  ;;  %vm289_vm3 = vcmp.eq.s32.totalorder %v2770_v53, %v250_v54 }
  0xd9   : > { %1844 = vmatprep.mubr.msk.f32.mxu0 %vm288_vm0, %v2590_v58  ;;  %1870 = vmatprep.mubr.msk.f32.mxu1 %vm290_vm1, %v2590_v58  ;;  %vm296_vm4 = vcmp.eq.s32.totalorder %v2764_v51, %v256_v59  ;;  %vm298_vm5 = vcmp.eq.s32.totalorder %v2767_v52, %v256_v59  ;;  %vm295_vm10 = vcmp.eq.s32.totalorder %v2761_v50, %v256_v59 }
  0xda   : > { %1845 = vmatmul.mubr.msk.f32.vlgmr.msra.gmra.mrb[0].mxu0 %vm287_vm2, %v2590_v58  ;;  %1871 = vmatmul.mubr.msk.f32.vlgmr.msra.gmra.mrb[0].mxu1 %vm289_vm3, %v2590_v58  ;;  %vm297_vm11 = vcmp.eq.s32.totalorder %v2770_v53, %v256_v59 }
  0xdb   : > { %v253_v60 = vpop.permute.xlu0 %252  ;;  %1067 = vmatpush1.bf16.msra.mxu0 %v2225_v55  ;;  %1168 = vmatpush1.bf16.msra.mxu1 %v2228_v56  ;;  %v259_v1 = vpop.permute.xlu1 %258 }
  0xdc   : > { %vm292_vm6 = vcmp.eq.s32.totalorder %v2764_v51, %v253_v60  ;;  %vm294_vm7 = vcmp.eq.s32.totalorder %v2767_v52, %v253_v60  ;;  %vm291_vm8 = vcmp.eq.s32.totalorder %v2761_v50, %v253_v60  ;;  %vm293_vm9 = vcmp.eq.s32.totalorder %v2770_v53, %v253_v60  ;;  %1068 = vmatprep.subr.bf16.mxu0 %v2233_v57 }
  0xdd   : > { %1846 = vmatprep.mubr.msk.f32.mxu0 %vm292_vm6, %v2590_v58  ;;  %1872 = vmatprep.mubr.msk.f32.mxu1 %vm294_vm7, %v2590_v58  ;;  %vm300_vm12 = vcmp.eq.s32.totalorder %v2764_v51, %v259_v1  ;;  %vm302_vm13 = vcmp.eq.s32.totalorder %v2767_v52, %v259_v1  ;;  %vm299_vm14 = vcmp.eq.s32.totalorder %v2761_v50, %v259_v1 }
  0xde   : > { %1847 = vmatmul.mubr.msk.f32.gmra.mrb[2].mxu0 %vm291_vm8, %v2590_v58  ;;  %1873 = vmatmul.mubr.msk.f32.gmra.mrb[2].mxu1 %vm293_vm9, %v2590_v58  ;;  %vm301_vm15 = vcmp.eq.s32.totalorder %v2770_v53, %v259_v1 }
  0xdf   : > { %1848 = vmatprep.mubr.msk.f32.mxu0 %vm296_vm4, %v2590_v58  ;;  %1874 = vmatprep.mubr.msk.f32.mxu1 %vm298_vm5, %v2590_v58  ;;  %v262_v3 = vpop.permute.xlu0 %261  ;;  %v265_v5 = vpop.permute.xlu1 %264 }
  0xe0   : > { %1069 = vmatpush1.bf16.msra.mxu0 %v2231_v61  ;;  %1169 = vmatprep.subr.bf16.mxu1 %v2236_v62  ;;  %vm304_vm0 = vcmp.eq.s32.totalorder %v2764_v51, %v262_v3  ;;  %vm306_vm1 = vcmp.eq.s32.totalorder %v2767_v52, %v262_v3  ;;  %vm303_vm2 = vcmp.eq.s32.totalorder %v2761_v50, %v262_v3 }
  0xe1   : > { %1170 = vmatpush1.bf16.msra.mxu1 %v2234_v63  ;;  %1070 = vmatprep.subr.bf16.mxu0 %v2239_v2  ;;  %vm305_vm3 = vcmp.eq.s32.totalorder %v2770_v53, %v262_v3  ;;  %vm308_vm4 = vcmp.eq.s32.totalorder %v2764_v51, %v265_v5  ;;  %vm310_vm5 = vcmp.eq.s32.totalorder %v2767_v52, %v265_v5 }
  0xe2   : > { %1849 = vmatmul.mubr.msk.f32.gmra.mrb[4].mxu0 %vm295_vm10, %v2590_v58  ;;  %1875 = vmatmul.mubr.msk.f32.gmra.mrb[4].mxu1 %vm297_vm11, %v2590_v58  ;;  %vm307_vm6 = vcmp.eq.s32.totalorder %v2761_v50, %v265_v5  ;;  %vm309_vm7 = vcmp.eq.s32.totalorder %v2770_v53, %v265_v5 }
  0xe3   : > { %1850 = vmatprep.mubr.msk.f32.mxu0 %vm300_vm12, %v2590_v58  ;;  %1876 = vmatprep.mubr.msk.f32.mxu1 %vm302_vm13, %v2590_v58  ;;  %v268_v6 = vpop.permute.xlu0 %267  ;;  %v271_v7 = vpop.permute.xlu1 %270 }
  0xe4   : > { %1071 = vmatpush1.bf16.msra.mxu0 %v2237_v4  ;;  %vm312_vm8 = vcmp.eq.s32.totalorder %v2764_v51, %v268_v6  ;;  %vm314_vm9 = vcmp.eq.s32.totalorder %v2767_v52, %v268_v6  ;;  %vm311_vm10 = vcmp.eq.s32.totalorder %v2761_v50, %v268_v6  ;;  %vm313_vm11 = vcmp.eq.s32.totalorder %v2770_v53, %v268_v6 }
  0xe5   : > { %vm316_vm12 = vcmp.eq.s32.totalorder %v2764_v51, %v271_v7  ;;  %vm318_vm13 = vcmp.eq.s32.totalorder %v2767_v52, %v271_v7  ;;  %1171 = vmatprep.subr.bf16.mxu1 %v2242_v13  ;;  %1072 = vmatprep.subr.bf16.mxu0 %v2245_v15 }
  0xe6   : > { %1851 = vmatmul.mubr.msk.f32.gmra.mrb[6].mxu0 %vm299_vm14, %v2590_v58  ;;  %1877 = vmatmul.mubr.msk.f32.gmra.mrb[6].mxu1 %vm301_vm15, %v2590_v58  ;;  %vm315_vm14 = vcmp.eq.s32.totalorder %v2761_v50, %v271_v7  ;;  %vm317_vm15 = vcmp.eq.s32.totalorder %v2770_v53, %v271_v7 }
  0xe7   : > { %1852 = vmatprep.mubr.msk.f32.mxu0 %vm304_vm0, %v2590_v58  ;;  %1878 = vmatprep.mubr.msk.f32.mxu1 %vm306_vm1, %v2590_v58  ;;  %v274_v8 = vpop.permute.xlu0 %273  ;;  %v277_v9 = vpop.permute.xlu1 %276 }
  0xe8   : > { %vm320_vm0 = vcmp.eq.s32.totalorder %v2764_v51, %v274_v8  ;;  %vm322_vm1 = vcmp.eq.s32.totalorder %v2767_v52, %v274_v8  ;;  %1172 = vmatpush1.bf16.msra.mxu1 %v2240_v14  ;;  %1073 = vmatpush1.bf16.msra.mxu0 %v2243_v17 }
  0xe9   : > { %1173 = vmatprep.subr.bf16.mxu1 %v2248_v16  ;;  %1074 = vmatprep.subr.bf16.mxu0 %v2251_v19 }
  0xea   : > { %1853 = vmatmul.mubr.msk.f32.gmra.mrb[8].mxu0 %vm303_vm2, %v2590_v58  ;;  %1879 = vmatmul.mubr.msk.f32.gmra.mrb[8].mxu1 %vm305_vm3, %v2590_v58  ;;  %vm319_vm2 = vcmp.eq.s32.totalorder %v2761_v50, %v274_v8  ;;  %vm321_vm3 = vcmp.eq.s32.totalorder %v2770_v53, %v274_v8 }
  0xeb   : > { %1854 = vmatprep.mubr.msk.f32.mxu0 %vm308_vm4, %v2590_v58  ;;  %1880 = vmatprep.mubr.msk.f32.mxu1 %vm310_vm5, %v2590_v58  ;;  %vm324_vm4 = vcmp.eq.s32.totalorder %v2764_v51, %v277_v9  ;;  %vm326_vm5 = vcmp.eq.s32.totalorder %v2767_v52, %v277_v9  ;;  %v280_v10 = vpop.permute.xlu0 %279  ;;  %v283_v11 = vpop.permute.xlu1 %282 }
  0xec   : > { %1174 = vmatpush1.bf16.msra.mxu1 %v2246_v18  ;;  %1075 = vmatpush1.bf16.msra.mxu0 %v2249_v21 }
  0xed   : > { %1175 = vmatprep.subr.bf16.mxu1 %v2254_v20  ;;  %1076 = vmatprep.subr.bf16.mxu0 %v2257_v23 }
  0xee   : > { %1855 = vmatmul.mubr.msk.f32.gmra.mrb[10].mxu0 %vm307_vm6, %v2590_v58  ;;  %1881 = vmatmul.mubr.msk.f32.gmra.mrb[10].mxu1 %vm309_vm7, %v2590_v58  ;;  %vm323_vm6 = vcmp.eq.s32.totalorder %v2761_v50, %v277_v9  ;;  %vm325_vm7 = vcmp.eq.s32.totalorder %v2770_v53, %v277_v9 }
  0xef   : > { %1856 = vmatprep.mubr.msk.f32.mxu0 %vm312_vm8, %v2590_v58  ;;  %1882 = vmatprep.mubr.msk.f32.mxu1 %vm314_vm9, %v2590_v58  ;;  %vm328_vm8 = vcmp.eq.s32.totalorder %v2764_v51, %v280_v10  ;;  %vm330_vm9 = vcmp.eq.s32.totalorder %v2767_v52, %v280_v10  ;;  %v286_v12 = vpop.permute.xlu0 %285 }
  0xf0   : > { %1176 = vmatpush1.bf16.msra.mxu1 %v2252_v22  ;;  %1077 = vmatpush1.bf16.msra.mxu0 %v2255_v25 }
  0xf1   : > { %1177 = vmatprep.subr.bf16.mxu1 %v2260_v24  ;;  %1078 = vmatprep.subr.bf16.mxu0 %v2263_v27 }
  0xf2   : > { %1857 = vmatmul.mubr.msk.f32.gmra.mrb[12].mxu0 %vm311_vm10, %v2590_v58  ;;  %1883 = vmatmul.mubr.msk.f32.gmra.mrb[12].mxu1 %vm313_vm11, %v2590_v58  ;;  %vm327_vm10 = vcmp.eq.s32.totalorder %v2761_v50, %v280_v10  ;;  %vm329_vm11 = vcmp.eq.s32.totalorder %v2770_v53, %v280_v10 }
  0xf3   : > { %1858 = vmatprep.mubr.msk.f32.mxu0 %vm316_vm12, %v2590_v58  ;;  %1884 = vmatprep.mubr.msk.f32.mxu1 %vm318_vm13, %v2590_v58  ;;  %vm332_vm12 = vcmp.eq.s32.totalorder %v2764_v51, %v283_v11  ;;  %vm334_vm13 = vcmp.eq.s32.totalorder %v2767_v52, %v283_v11 }
  0xf4   : > { %1178 = vmatpush1.bf16.msra.mxu1 %v2258_v26  ;;  %1079 = vmatpush1.bf16.msra.mxu0 %v2261_v29 }
  0xf5   : > { %1179 = vmatprep.subr.bf16.mxu1 %v2266_v28  ;;  %1080 = vmatprep.subr.bf16.mxu0 %v2269_v31 }
  0xf6   : > { %1859 = vmatmul.mubr.msk.f32.gmra.mrb[14].mxu0 %vm315_vm14, %v2590_v58  ;;  %1885 = vmatmul.mubr.msk.f32.gmra.mrb[14].mxu1 %vm317_vm15, %v2590_v58  ;;  %vm331_vm14 = vcmp.eq.s32.totalorder %v2761_v50, %v283_v11  ;;  %vm333_vm15 = vcmp.eq.s32.totalorder %v2770_v53, %v283_v11 }
  0xf7   : > { %1860 = vmatprep.mubr.msk.f32.mxu0 %vm320_vm0, %v2590_v58  ;;  %1886 = vmatprep.mubr.msk.f32.mxu1 %vm322_vm1, %v2590_v58  ;;  %vm336_vm0 = vcmp.eq.s32.totalorder %v2764_v51, %v286_v12  ;;  %vm338_vm1 = vcmp.eq.s32.totalorder %v2767_v52, %v286_v12 }
  0xf8   : > { %1180 = vmatpush1.bf16.msra.mxu1 %v2264_v30  ;;  %1081 = vmatpush1.bf16.msra.mxu0 %v2267_v33 }
  0xf9   : > { %1181 = vmatprep.subr.bf16.mxu1 %v2272_v32 }
  0xfa   : > { %1861 = vmatmul.mubr.msk.f32.gmra.mrb[16].mxu0 %vm319_vm2, %v2590_v58  ;;  %1887 = vmatmul.mubr.msk.f32.gmra.mrb[16].mxu1 %vm321_vm3, %v2590_v58  ;;  %vm335_vm2 = vcmp.eq.s32.totalorder %v2761_v50, %v286_v12  ;;  %vm337_vm3 = vcmp.eq.s32.totalorder %v2770_v53, %v286_v12 }
  0xfb   : > { %1862 = vmatprep.mubr.msk.f32.mxu0 %vm324_vm4, %v2590_v58  ;;  %1888 = vmatprep.mubr.msk.f32.mxu1 %vm326_vm5, %v2590_v58 }
  0xfc   : > { %1182 = vmatpush1.bf16.msra.mxu1 %v2270_v34 }
  0xfe   : > { %1863 = vmatmul.mubr.msk.f32.gmra.mrb[18].mxu0 %vm323_vm6, %v2590_v58  ;;  %1889 = vmatmul.mubr.msk.f32.gmra.mrb[18].mxu1 %vm325_vm7, %v2590_v58 }
  0xff   : > { %1864 = vmatprep.mubr.msk.f32.mxu0 %vm328_vm8, %v2590_v58  ;;  %1890 = vmatprep.mubr.msk.f32.mxu1 %vm330_vm9, %v2590_v58 }
 0x102   : > { %1865 = vmatmul.mubr.msk.f32.gmra.mrb[20].mxu0 %vm327_vm10, %v2590_v58  ;;  %1891 = vmatmul.mubr.msk.f32.gmra.mrb[20].mxu1 %vm329_vm11, %v2590_v58 }
 0x103   : > { %1866 = vmatprep.mubr.msk.f32.mxu0 %vm332_vm12, %v2590_v58  ;;  %1892 = vmatprep.mubr.msk.f32.mxu1 %vm334_vm13, %v2590_v58 }
 0x106   : > { %1867 = vmatmul.mubr.msk.f32.gmra.mrb[22].mxu0 %vm331_vm14, %v2590_v58  ;;  %1893 = vmatmul.mubr.msk.f32.gmra.mrb[22].mxu1 %vm333_vm15, %v2590_v58 }
 0x107   : > { %1868 = vmatprep.mubr.msk.f32.mxu0 %vm336_vm0, %v2590_v58  ;;  %1894 = vmatprep.mubr.msk.f32.mxu1 %vm338_vm1, %v2590_v58 }
 0x10a   : > { %1869 = vmatmul.mubr.msk.f32.gmra.mrb[24].mxu0 %vm335_vm2, %v2590_v58  ;;  %1895 = vmatmul.mubr.msk.f32.gmra.mrb[24].mxu1 %vm337_vm3, %v2590_v58 }
 0x10b   : > { %1098 = vmatprep.mubr.bf16.mxu0 %v2589_v0  ;;  %1199 = vmatprep.mubr.bf16.mxu1 %v2589_v0 }
 0x1ad   : > { %v1980_v35 = vpop.f32.mrb[0].mxu0  ;;  %v2051_v36 = vpop.f32.mrb[0].mxu1 }
 0x1ae   : > { %v1981_v37 = vpop.f32.mrb[1].mxu0  ;;  %v2052_v38 = vpop.f32.mrb[1].mxu1 }
 0x1af   : > { %v1982_v39 = vadd.f32 %v1981_v37, %v1980_v35  ;;  %v2053_v40 = vadd.f32 %v2052_v38, %v2051_v36 }
 0x1b1   : > { %v704_v41 = vadd.f32 %v2053_v40, %v1982_v39  ;;  %v1983_v42 = vpop.f32.mrb[2].mxu0  ;;  %v2054_v43 = vpop.f32.mrb[2].mxu1 }
 0x1b2   : > { %v1984_v44 = vpop.f32.mrb[3].mxu0  ;;  %v2055_v45 = vpop.f32.mrb[3].mxu1 }
 0x1b3   : > { %v1896_v46 = vmul.f32 -1.442695, %v704_v41  ;;  %v1985_v47 = vadd.f32 %v1984_v44, %v1983_v42  ;;  %v2056_v48 = vadd.f32 %v2055_v45, %v2054_v43 }
 0x1b5   : > { %2273 = vpow2.f32 %v1896_v46  ;;  %v709_v50 = vadd.f32 %v2056_v48, %v1985_v47  ;;  %v1986_v51 = vpop.f32.mrb[4].mxu0  ;;  %v2057_v52 = vpop.f32.mrb[4].mxu1 }
 0x1b6   : > { %v1987_v53 = vpop.f32.mrb[5].mxu0  ;;  %v2058_v54 = vpop.f32.mrb[5].mxu1 }
 0x1b7   : > { %v1897_v55 = vmul.f32 -1.442695, %v709_v50  ;;  %v1988_v56 = vadd.f32 %v1987_v53, %v1986_v51  ;;  %v2059_v57 = vadd.f32 %v2058_v54, %v2057_v52 }
 0x1b9   : > { %2275 = vpow2.f32 %v1897_v55  ;;  %v714_v58 = vadd.f32 %v2059_v57, %v1988_v56  ;;  %v1989_v59 = vpop.f32.mrb[6].mxu0  ;;  %v2060_v60 = vpop.f32.mrb[6].mxu1 }
 0x1ba   : > { %v1990_v61 = vpop.f32.mrb[7].mxu0  ;;  %v2061_v62 = vpop.f32.mrb[7].mxu1 }
 0x1bb   : > { %v1898_v63 = vmul.f32 -1.442695, %v714_v58  ;;  %v1991_v1 = vadd.f32 %v1990_v61, %v1989_v59  ;;  %v2062_v2 = vadd.f32 %v2061_v62, %v2060_v60 }
 0x1bd   : > { %2277 = vpow2.f32 %v1898_v63  ;;  %v719_v3 = vadd.f32 %v2062_v2, %v1991_v1  ;;  %v1992_v4 = vpop.f32.mrb[8].mxu0  ;;  %v2063_v5 = vpop.f32.mrb[8].mxu1 }
 0x1be   : > { %v1993_v6 = vpop.f32.mrb[9].mxu0  ;;  %v2064_v7 = vpop.f32.mrb[9].mxu1 }
 0x1bf   : > { %v2274_v8 = vpop.eup %2273  ;;  %v1899_v9 = vmul.f32 -1.442695, %v719_v3  ;;  %v1994_v10 = vadd.f32 %v1993_v6, %v1992_v4  ;;  %v2065_v11 = vadd.f32 %v2064_v7, %v2063_v5 }
 0x1c0   : > { %v806_v12 = vadd.f32 1.0, %v2274_v8 }
 0x1c1   : > { %2279 = vpow2.f32 %v1899_v9  ;;  %v724_v13 = vadd.f32 %v2065_v11, %v1994_v10  ;;  %v1995_v14 = vpop.f32.mrb[10].mxu0  ;;  %v2066_v15 = vpop.f32.mrb[10].mxu1 }
 0x1c2   : > { %v1996_v16 = vpop.f32.mrb[11].mxu0  ;;  %v2067_v17 = vpop.f32.mrb[11].mxu1  ;;  %2281 = vrcp.f32 %v806_v12 }
 0x1c3   : > { %v2276_v18 = vpop.eup %2275  ;;  %v1900_v19 = vmul.f32 -1.442695, %v724_v13  ;;  %v1997_v20 = vadd.f32 %v1996_v16, %v1995_v14  ;;  %v2068_v21 = vadd.f32 %v2067_v17, %v2066_v15 }
 0x1c4   : > { %v807_v22 = vadd.f32 1.0, %v2276_v18 }
 0x1c5   : > { %2283 = vpow2.f32 %v1900_v19  ;;  %v729_v23 = vadd.f32 %v2068_v21, %v1997_v20  ;;  %v1998_v24 = vpop.f32.mrb[12].mxu0  ;;  %v2069_v25 = vpop.f32.mrb[12].mxu1 }
 0x1c6   : > { %2285 = vrcp.f32 %v807_v22  ;;  %v1999_v26 = vpop.f32.mrb[13].mxu0  ;;  %v2070_v27 = vpop.f32.mrb[13].mxu1 }
 0x1c7   : > { %v2278_v28 = vpop.eup %2277  ;;  %v1901_v29 = vmul.f32 -1.442695, %v729_v23  ;;  %v2000_v30 = vadd.f32 %v1999_v26, %v1998_v24  ;;  %v2071_v31 = vadd.f32 %v2070_v27, %v2069_v25 }
 0x1c8   : > { %v808_v32 = vadd.f32 1.0, %v2278_v28 }
 0x1c9   : > { %2287 = vpow2.f32 %v1901_v29  ;;  %v734_v33 = vadd.f32 %v2071_v31, %v2000_v30  ;;  %v2001_v34 = vpop.f32.mrb[14].mxu0  ;;  %v2072_v35 = vpop.f32.mrb[14].mxu1 }
 0x1ca   : > { %v2002_v36 = vpop.f32.mrb[15].mxu0  ;;  %v2073_v37 = vpop.f32.mrb[15].mxu1  ;;  %2289 = vrcp.f32 %v808_v32 }
 0x1cb   : > { %v2280_v38 = vpop.eup %2279  ;;  %v1902_v39 = vmul.f32 -1.442695, %v734_v33  ;;  %v2003_v40 = vadd.f32 %v2002_v36, %v2001_v34  ;;  %v2074_v41 = vadd.f32 %v2073_v37, %v2072_v35 }
 0x1cc   : > { %v809_v42 = vadd.f32 1.0, %v2280_v38  ;;  %v2282_v46 = vpop.eup %2281 }
 0x1cd   : > { %2291 = vpow2.f32 %v1902_v39  ;;  %v739_v43 = vadd.f32 %v2074_v41, %v2003_v40  ;;  %v2004_v44 = vpop.f32.mrb[16].mxu0  ;;  %v2075_v45 = vpop.f32.mrb[16].mxu1 }
 0x1ce   : > { %2293 = vrcp.f32 %v809_v42  ;;  %v2005_v47 = vpop.f32.mrb[17].mxu0  ;;  %v2076_v48 = vpop.f32.mrb[17].mxu1 }
 0x1cf   : > { %v2284_v50 = vpop.eup %2283  ;;  %v1903_v51 = vmul.f32 -1.442695, %v739_v43  ;;  %v2006_v52 = vadd.f32 %v2005_v47, %v2004_v44  ;;  %v2077_v53 = vadd.f32 %v2076_v48, %v2075_v45 }
 0x1d0   : > { %v2286_v54 = vpop.eup %2285  ;;  %v810_v55 = vadd.f32 1.0, %v2284_v50 }
 0x1d1   : > { %2295 = vpow2.f32 %v1903_v51  ;;  %v744_v56 = vadd.f32 %v2077_v53, %v2006_v52  ;;  %v2007_v57 = vpop.f32.mrb[18].mxu0  ;;  %v2078_v58 = vpop.f32.mrb[18].mxu1  ;;  %v845_v59 = vpack.c.bf16 %v2286_v54, %v2282_v46 }
 0x1d2   : > { %v2008_v60 = vpop.f32.mrb[19].mxu0  ;;  %v2079_v61 = vpop.f32.mrb[19].mxu1  ;;  %2297 = vrcp.f32 %v810_v55 }
 0x1d3   : > { %v2288_v62 = vpop.eup %2287  ;;  %v1904_v63 = vmul.f32 -1.442695, %v744_v56  ;;  %v2009_v1 = vadd.f32 %v2008_v60, %v2007_v57  ;;  %v2080_v2 = vadd.f32 %v2079_v61, %v2078_v58  ;;  %1099 = vmatmul.mubr.bf16.vlgmr.msra.gmra.mrb[28].mxu0 %v845_v59  ;;  %1200 = vmatmul.mubr.bf16.vlgmr.msra.gmra.mrb[28].mxu1 %v845_v59 }
 0x1d4   : > { %v811_v3 = vadd.f32 1.0, %v2288_v62  ;;  %1108 = vmatprep.mubr.bf16.mxu0 %v2589_v0  ;;  %1209 = vmatprep.mubr.bf16.mxu1 %v2589_v0  ;;  %v2290_v7 = vpop.eup %2289  ;;  %v887_v62 = vshrl.u32 %v243_v49, 7 }
 0x1d5   : > { %2299 = vpow2.f32 %v1904_v63  ;;  %v749_v4 = vadd.f32 %v2080_v2, %v2009_v1  ;;  %v2010_v5 = vpop.f32.mrb[20].mxu0  ;;  %v2081_v6 = vpop.f32.mrb[20].mxu1  ;;  %v884_v1 = vld [vmem:[%s3482_s3] sm:$0xf] }
 0x1d6   : > { %2301 = vrcp.f32 %v811_v3  ;;  %v2011_v8 = vpop.f32.mrb[21].mxu0  ;;  %v2082_v9 = vpop.f32.mrb[21].mxu1  ;;  %v888_v63 = vsub.s32 0, %v887_v62  ;;  %v892_v2 = vsub.s32 1, %v887_v62  ;;  %v896_v3 = vsub.s32 2, %v887_v62 }
 0x1d7   : > { %v2292_v10 = vpop.eup %2291  ;;  %v1905_v11 = vmul.f32 -1.442695, %v749_v4  ;;  %v2012_v12 = vadd.f32 %v2011_v8, %v2010_v5  ;;  %v2083_v13 = vadd.f32 %v2082_v9, %v2081_v6  ;;  %v900_v6 = vsub.s32 3, %v887_v62 }
 0x1d8   : > { %v2294_v14 = vpop.eup %2293  ;;  %v812_v15 = vadd.f32 1.0, %v2292_v10  ;;  %v2894_v4 = vrot.slane %v884_v1, %v888_v63  ;;  %v2896_v5 = vrot.slane %v884_v1, %v892_v2 }
 0x1d9   : > { %2303 = vpow2.f32 %v1905_v11  ;;  %v754_v16 = vadd.f32 %v2083_v13, %v2012_v12  ;;  %v2013_v17 = vpop.f32.mrb[22].mxu0  ;;  %v2084_v18 = vpop.f32.mrb[22].mxu1  ;;  %v846_v19 = vpack.c.bf16 %v2294_v14, %v2290_v7  ;;  %v2906_v12 = vrot.slane %v884_v1, %v900_v6 }
 0x1da   : > { %v2014_v20 = vpop.f32.mrb[23].mxu0  ;;  %v2085_v21 = vpop.f32.mrb[23].mxu1  ;;  %2305 = vrcp.f32 %v812_v15 }
 0x1db   : > { %v2296_v22 = vpop.eup %2295  ;;  %v1906_v23 = vmul.f32 -1.442695, %v754_v16  ;;  %v2015_v24 = vadd.f32 %v2014_v20, %v2013_v17  ;;  %v2086_v25 = vadd.f32 %v2085_v21, %v2084_v18  ;;  %1109 = vmatmul.mubr.bf16.gmra.mrb[32].mxu0 %v846_v19  ;;  %1210 = vmatmul.mubr.bf16.gmra.mrb[32].mxu1 %v846_v19 }
 0x1dc   : > { %v813_v26 = vadd.f32 1.0, %v2296_v22  ;;  %1118 = vmatprep.mubr.bf16.mxu0 %v2589_v0  ;;  %1219 = vmatprep.mubr.bf16.mxu1 %v2589_v0  ;;  %v2298_v30 = vpop.eup %2297 }
 0x1dd   : > { %2307 = vpow2.f32 %v1906_v23  ;;  %v759_v27 = vadd.f32 %v2086_v25, %v2015_v24  ;;  %v2016_v28 = vpop.f32.mrb[24].mxu0  ;;  %v2087_v29 = vpop.f32.mrb[24].mxu1 }
 0x1de   : > { %2309 = vrcp.f32 %v813_v26  ;;  %v2017_v31 = vpop.f32.mrb[25].mxu0  ;;  %v2088_v32 = vpop.f32.mrb[25].mxu1 }
 0x1df   : > { %v2300_v33 = vpop.eup %2299  ;;  %v1907_v34 = vmul.f32 -1.442695, %v759_v27  ;;  %v2018_v35 = vadd.f32 %v2017_v31, %v2016_v28  ;;  %v2089_v36 = vadd.f32 %v2088_v32, %v2087_v29 }
 0x1e0   : > { %v2302_v37 = vpop.eup %2301  ;;  %v814_v38 = vadd.f32 1.0, %v2300_v33 }
 0x1e1   : > { %2311 = vpow2.f32 %v1907_v34  ;;  %v764_v39 = vadd.f32 %v2089_v36, %v2018_v35  ;;  %v847_v40 = vpack.c.bf16 %v2302_v37, %v2298_v30 }
 0x1e2   : > { %2313 = vrcp.f32 %v814_v38 }
 0x1e3   : > { %v2304_v41 = vpop.eup %2303  ;;  %v1908_v42 = vmul.f32 -1.442695, %v764_v39  ;;  %1119 = vmatmul.mubr.bf16.gmra.mrb[36].mxu0 %v847_v40  ;;  %1220 = vmatmul.mubr.bf16.gmra.mrb[36].mxu1 %v847_v40 }
 0x1e4   : > { %v815_v43 = vadd.f32 1.0, %v2304_v41  ;;  %1128 = vmatprep.mubr.bf16.mxu0 %v2589_v0  ;;  %1229 = vmatprep.mubr.bf16.mxu1 %v2589_v0  ;;  %v2306_v44 = vpop.eup %2305 }
 0x1e5   : > { %2315 = vpow2.f32 %v1908_v42 }
 0x1e6   : > { %2317 = vrcp.f32 %v815_v43 }
 0x1e7   : > { %v2308_v45 = vpop.eup %2307 }
 0x1e8   : > { %v2310_v46 = vpop.eup %2309  ;;  %v816_v47 = vadd.f32 1.0, %v2308_v45 }
 0x1e9   : > { %v848_v48 = vpack.c.bf16 %v2310_v46, %v2306_v44 }
 0x1ea   : > { %2319 = vrcp.f32 %v816_v47 }
 0x1eb   : > { %v2312_v50 = vpop.eup %2311  ;;  %1129 = vmatmul.mubr.bf16.gmra.mrb[40].mxu0 %v848_v48  ;;  %1230 = vmatmul.mubr.bf16.gmra.mrb[40].mxu1 %v848_v48 }
 0x1ec   : > { %v817_v51 = vadd.f32 1.0, %v2312_v50  ;;  %1138 = vmatprep.mubr.bf16.mxu0 %v2589_v0  ;;  %1239 = vmatprep.mubr.bf16.mxu1 %v2589_v0  ;;  %v2314_v52 = vpop.eup %2313 }
 0x1ee   : > { %2321 = vrcp.f32 %v817_v51 }
 0x1ef   : > { %v2316_v53 = vpop.eup %2315 }
 0x1f0   : > { %v2318_v54 = vpop.eup %2317  ;;  %v818_v55 = vadd.f32 1.0, %v2316_v53 }
 0x1f1   : > { %v849_v56 = vpack.c.bf16 %v2318_v54, %v2314_v52 }
 0x1f2   : > { %2323 = vrcp.f32 %v818_v55 }
 0x1f3   : > { %1139 = vmatmul.mubr.bf16.gmra.mrb[44].mxu0 %v849_v56  ;;  %1240 = vmatmul.mubr.bf16.gmra.mrb[44].mxu1 %v849_v56 }
 0x1f4   : > { %1148 = vmatprep.mubr.bf16.mxu0 %v2589_v0  ;;  %1249 = vmatprep.mubr.bf16.mxu1 %v2589_v0  ;;  %v2320_v57 = vpop.eup %2319 }
 0x1f8   : > { %v2322_v58 = vpop.eup %2321 }
 0x1f9   : > { %v850_v59 = vpack.c.bf16 %v2322_v58, %v2320_v57 }
 0x1fb   : > { %1149 = vmatmul.mubr.bf16.gmra.mrb[48].mxu0 %v850_v59  ;;  %1250 = vmatmul.mubr.bf16.gmra.mrb[48].mxu1 %v850_v59 }
 0x1fc   : > { %1158 = vmatprep.mubr.bf16.mxu0 %v2589_v0  ;;  %1259 = vmatprep.mubr.bf16.mxu1 %v2589_v0  ;;  %v2324_v60 = vpop.eup %2323  ;;  %v2898_v0 = vrot.slane %v884_v1, %v896_v3 }
 0x1fd   : > { %v851_v61 = vpack.c.bf16 %v2324_v60, %v2324_v60 }
 0x203   : > { %1159 = vmatmul.mubr.bf16.gmra.mrb[52].mxu0 %v851_v61  ;;  %1260 = vmatmul.mubr.bf16.gmra.mrb[52].mxu1 %v851_v61 }
 0x2a6   : > { %v1100_v7 = vpop.f32.mrb[28].mxu0  ;;  %v1201_v8 = vpop.f32.mrb[28].mxu1 }
 0x2a7   : > { %v2901_v9 = vadd.f32 %v1100_v7, %v2894_v4  ;;  %v1102_v49 = vpop.f32.mrb[29].mxu0  ;;  %v1203_v10 = vpop.f32.mrb[29].mxu1  ;;  %v2912_v18 = vadd.f32 %v1201_v8, %v2898_v0 }
 0x2a8   : > { %v2904_v11 = vadd.f32 %v1102_v49, %v2896_v5  ;;  %v1104_v13 = vpop.f32.mrb[30].mxu0  ;;  %v1205_v14 = vpop.f32.mrb[30].mxu1  ;;  %v2920_v21 = vadd.f32 %v1203_v10, %v2906_v12 }
 0x2a9   : > { %v2909_v15 = vadd.f32 %v1104_v13, %v2894_v4  ;;  %v1106_v16 = vpop.f32.mrb[31].mxu0  ;;  %v1207_v17 = vpop.f32.mrb[31].mxu1  ;;  %v2923_v22 = vadd.f32 %v1205_v14, %v2898_v0 }
 0x2aa   : > { %v1268_v19 = vmax.f32 %v2901_v9, %v2904_v11  ;;  %v2917_v20 = vadd.f32 %v1106_v16, %v2896_v5  ;;  %v2929_v25 = vadd.f32 %v1207_v17, %v2906_v12 }
 0x2ac   : > { %v1273_v23 = vmax.f32 %v2909_v15, %v2917_v20  ;;  %v1269_v24 = vmax.f32 %v1268_v19, %v2912_v18 }
 0x2ae   : > { %v1110_v26 = vpop.f32.mrb[32].mxu0  ;;  %v1211_v27 = vpop.f32.mrb[32].mxu1  ;;  %v1270_v28 = vmax.f32 %v1269_v24, %v2920_v21  ;;  %v1274_v29 = vmax.f32 %v1273_v23, %v2923_v22 }
 0x2af   : > { %v2934_v30 = vadd.f32 %v1110_v26, %v2894_v4  ;;  %v1112_v31 = vpop.f32.mrb[33].mxu0  ;;  %v1213_v32 = vpop.f32.mrb[33].mxu1  ;;  %v2944_v40 = vadd.f32 %v1211_v27, %v2898_v0 }
 0x2b0   : > { %v2937_v33 = vadd.f32 %v1112_v31, %v2896_v5  ;;  %v1114_v34 = vpop.f32.mrb[34].mxu0  ;;  %v1215_v35 = vpop.f32.mrb[34].mxu1  ;;  %1271 = vmax.xlane.f32.xlu1 %v1270_v28  ;;  %v1275_v36 = vmax.f32 %v1274_v29, %v2929_v25  ;;  %v2952_v43 = vadd.f32 %v1213_v32, %v2906_v12 }
 0x2b1   : > { %v2941_v37 = vadd.f32 %v1114_v34, %v2894_v4  ;;  %v1116_v38 = vpop.f32.mrb[35].mxu0  ;;  %v1217_v39 = vpop.f32.mrb[35].mxu1  ;;  %v2955_v44 = vadd.f32 %v1215_v35, %v2898_v0 }
 0x2b2   : > { %v1278_v41 = vmax.f32 %v2934_v30, %v2937_v33  ;;  %v2949_v42 = vadd.f32 %v1116_v38, %v2896_v5  ;;  %1276 = vmax.xlane.f32.xlu0 %v1275_v36  ;;  %v2961_v47 = vadd.f32 %v1217_v39, %v2906_v12 }
 0x2b4   : > { %v1283_v45 = vmax.f32 %v2941_v37, %v2949_v42  ;;  %v1279_v46 = vmax.f32 %v1278_v41, %v2944_v40 }
 0x2b6   : > { %v1120_v48 = vpop.f32.mrb[36].mxu0  ;;  %v1221_v50 = vpop.f32.mrb[36].mxu1  ;;  %v1280_v51 = vmax.f32 %v1279_v46, %v2952_v43  ;;  %v1284_v52 = vmax.f32 %v1283_v45, %v2955_v44 }
 0x2b7   : > { %v2966_v53 = vadd.f32 %v1120_v48, %v2894_v4  ;;  %v1122_v54 = vpop.f32.mrb[37].mxu0  ;;  %v1223_v55 = vpop.f32.mrb[37].mxu1  ;;  %v2976_v63 = vadd.f32 %v1221_v50, %v2898_v0 }
 0x2b8   : > { %v2969_v56 = vadd.f32 %v1122_v54, %v2896_v5  ;;  %v1124_v57 = vpop.f32.mrb[38].mxu0  ;;  %v1225_v58 = vpop.f32.mrb[38].mxu1  ;;  %1281 = vmax.xlane.f32.xlu0 %v1280_v51  ;;  %v1285_v59 = vmax.f32 %v1284_v52, %v2961_v47  ;;  %v2984_v3 = vadd.f32 %v1223_v55, %v2906_v12 }
 0x2b9   : > { %v2973_v60 = vadd.f32 %v1124_v57, %v2894_v4  ;;  %v1126_v61 = vpop.f32.mrb[39].mxu0  ;;  %v1227_v62 = vpop.f32.mrb[39].mxu1  ;;  %v2987_v6 = vadd.f32 %v1225_v58, %v2898_v0 }
 0x2ba   : > { %v1288_v1 = vmax.f32 %v2966_v53, %v2969_v56  ;;  %v2981_v2 = vadd.f32 %v1126_v61, %v2896_v5  ;;  %1286 = vmax.xlane.f32.xlu1 %v1285_v59  ;;  %v2993_v49 = vadd.f32 %v1227_v62, %v2906_v12 }
 0x2bc   : > { %v1293_v7 = vmax.f32 %v2973_v60, %v2981_v2  ;;  %v1289_v8 = vmax.f32 %v1288_v1, %v2976_v63 }
 0x2be   : > { %v1130_v10 = vpop.f32.mrb[40].mxu0  ;;  %v1231_v13 = vpop.f32.mrb[40].mxu1  ;;  %v1290_v14 = vmax.f32 %v1289_v8, %v2984_v3  ;;  %v1294_v16 = vmax.f32 %v1293_v7, %v2987_v6 }
 0x2bf   : > { %v2998_v17 = vadd.f32 %v1130_v10, %v2894_v4  ;;  %v1132_v19 = vpop.f32.mrb[41].mxu0  ;;  %v1233_v23 = vpop.f32.mrb[41].mxu1  ;;  %v3008_v34 = vadd.f32 %v1231_v13, %v2898_v0 }
 0x2c0   : > { %v3001_v24 = vadd.f32 %v1132_v19, %v2896_v5  ;;  %v1134_v26 = vpop.f32.mrb[42].mxu0  ;;  %v1235_v27 = vpop.f32.mrb[42].mxu1  ;;  %1291 = vmax.xlane.f32.xlu0 %v1290_v14  ;;  %v1295_v28 = vmax.f32 %v1294_v16, %v2993_v49  ;;  %v3016_v38 = vadd.f32 %v1233_v23, %v2906_v12 }
 0x2c1   : > { %v3005_v29 = vadd.f32 %v1134_v26, %v2894_v4  ;;  %v1136_v31 = vpop.f32.mrb[43].mxu0  ;;  %v1237_v32 = vpop.f32.mrb[43].mxu1  ;;  %v3019_v39 = vadd.f32 %v1235_v27, %v2898_v0 }
 0x2c2   : > { %v1298_v35 = vmax.f32 %v2998_v17, %v3001_v24  ;;  %v3013_v36 = vadd.f32 %v1136_v31, %v2896_v5  ;;  %1296 = vmax.xlane.f32.xlu1 %v1295_v28  ;;  %v3025_v46 = vadd.f32 %v1237_v32, %v2906_v12 }
 0x2c4   : > { %v1303_v41 = vmax.f32 %v3005_v29, %v3013_v36  ;;  %v1299_v45 = vmax.f32 %v1298_v35, %v3008_v34 }
 0x2c6   : > { %v1140_v48 = vpop.f32.mrb[44].mxu0  ;;  %v1241_v50 = vpop.f32.mrb[44].mxu1  ;;  %v1300_v51 = vmax.f32 %v1299_v45, %v3016_v38  ;;  %v1304_v52 = vmax.f32 %v1303_v41, %v3019_v39 }
 0x2c7   : > { %v3030_v54 = vadd.f32 %v1140_v48, %v2894_v4  ;;  %v1142_v55 = vpop.f32.mrb[45].mxu0  ;;  %v1243_v57 = vpop.f32.mrb[45].mxu1  ;;  %v3040_v10 = vadd.f32 %v1241_v50, %v2898_v0 }
 0x2c8   : > { %v3033_v58 = vadd.f32 %v1142_v55, %v2896_v5  ;;  %v1144_v59 = vpop.f32.mrb[46].mxu0  ;;  %v1245_v61 = vpop.f32.mrb[46].mxu1  ;;  %1301 = vmax.xlane.f32.xlu0 %v1300_v51  ;;  %v1305_v62 = vmax.f32 %v1304_v52, %v3025_v46  ;;  %v3048_v16 = vadd.f32 %v1243_v57, %v2906_v12 }
 0x2c9   : > { %v3037_v1 = vadd.f32 %v1144_v59, %v2894_v4  ;;  %v1146_v7 = vpop.f32.mrb[47].mxu0  ;;  %v1247_v8 = vpop.f32.mrb[47].mxu1  ;;  %v3051_v19 = vadd.f32 %v1245_v61, %v2898_v0 }
 0x2ca   : > { %v1308_v13 = vmax.f32 %v3030_v54, %v3033_v58  ;;  %v3045_v14 = vadd.f32 %v1146_v7, %v2896_v5  ;;  %1306 = vmax.xlane.f32.xlu1 %v1305_v62  ;;  %v3057_v27 = vadd.f32 %v1247_v8, %v2906_v12 }
 0x2cc   : > { %v1313_v23 = vmax.f32 %v3037_v1, %v3045_v14  ;;  %v1309_v26 = vmax.f32 %v1308_v13, %v3040_v10 }
 0x2ce   : > { %v1150_v28 = vpop.f32.mrb[48].mxu0  ;;  %v1251_v31 = vpop.f32.mrb[48].mxu1  ;;  %v1310_v32 = vmax.f32 %v1309_v26, %v3048_v16  ;;  %v1314_v35 = vmax.f32 %v1313_v23, %v3051_v19 }
 0x2cf   : > { %v3062_v41 = vadd.f32 %v1150_v28, %v2894_v4  ;;  %v1152_v45 = vpop.f32.mrb[49].mxu0  ;;  %v1253_v48 = vpop.f32.mrb[49].mxu1  ;;  %v3072_v62 = vadd.f32 %v1251_v31, %v2898_v0 }
 0x2d0   : > { %v3065_v50 = vadd.f32 %v1152_v45, %v2896_v5  ;;  %v1154_v51 = vpop.f32.mrb[50].mxu0  ;;  %v1255_v52 = vpop.f32.mrb[50].mxu1  ;;  %1311 = vmax.xlane.f32.xlu0 %v1310_v32  ;;  %v1315_v55 = vmax.f32 %v1314_v35, %v3057_v27  ;;  %v3080_v13 = vadd.f32 %v1253_v48, %v2906_v12 }
 0x2d1   : > { %v3069_v57 = vadd.f32 %v1154_v51, %v2894_v4  ;;  %v1156_v59 = vpop.f32.mrb[51].mxu0  ;;  %v1257_v61 = vpop.f32.mrb[51].mxu1  ;;  %3513 = vst [vmem:[#allocation13_spill] sm:$0xff] %v3072_v62  ;;  %v3083_v23 = vadd.f32 %v1255_v52, %v2898_v0 }
 0x2d2   : > { %3511 = vst [vmem:[#allocation11_spill] sm:$0xff] %v3065_v50  ;;  %v1318_v7 = vmax.f32 %v3062_v41, %v3065_v50  ;;  %v3077_v8 = vadd.f32 %v1156_v59, %v2896_v5  ;;  %1316 = vmax.xlane.f32.xlu1 %v1315_v55  ;;  %v3089_v31 = vadd.f32 %v1257_v61, %v2906_v12 }
 0x2d3   : > { %3512 = vst [vmem:[#allocation12_spill] sm:$0xff] %v3069_v57 }
 0x2d4   : > { %3514 = vst [vmem:[#allocation14_spill] sm:$0xff] %v3077_v8  ;;  %v1323_v26 = vmax.f32 %v3069_v57, %v3077_v8  ;;  %v1319_v28 = vmax.f32 %v1318_v7, %v3072_v62 }
 0x2d6   : > { %v1160_v32 = vpop.f32.mrb[52].mxu0  ;;  %v1261_v35 = vpop.f32.mrb[52].mxu1  ;;  %v1320_v45 = vmax.f32 %v1319_v28, %v3080_v13  ;;  %v1324_v51 = vmax.f32 %v1323_v26, %v3083_v23 }
 0x2d7   : > { %v3094_v48 = vadd.f32 %v1160_v32, %v2894_v4  ;;  %v1162_v55 = vpop.f32.mrb[53].mxu0  ;;  %v1263_v52 = vpop.f32.mrb[53].mxu1  ;;  %v3101_v50 = vadd.f32 %v1261_v35, %v2898_v0 }
 0x2d8   : > { %v3097_v59 = vadd.f32 %v1162_v55, %v2896_v5  ;;  %1321 = vmax.xlane.f32.xlu0 %v1320_v45  ;;  %v1164_v8 = vpop.f32.mrb[54].mxu0  ;;  %v1265_v7 = vpop.f32.mrb[54].mxu1  ;;  %v1325_v61 = vmax.f32 %v1324_v51, %v3089_v31  ;;  %v3106_v4 = vadd.f32 %v1263_v52, %v2906_v12 }
 0x2d9   : > { %v1165_v57 = vpop.f32.mrb[55].mxu0  ;;  %v1266_v62 = vpop.f32.mrb[55].mxu1 }
 0x2da   : > { %v1328_v26 = vmax.f32 %v3094_v48, %v3097_v59  ;;  %1326 = vmax.xlane.f32.xlu1 %v1325_v61 }
 0x2dc   : > { %v1329_v5 = vmax.f32 %v1328_v26, %v3101_v50 }
 0x2de   : > { %v1330_v28 = vmax.f32 %v1329_v5, %v3106_v4 }
 0x2e0   : > { %1331 = vmax.xlane.f32.xlu0 %v1330_v28 }
 0x33d   : > { %v1272_v8 = vpop.xlane.xlu1 %1271 }
 0x33e   : > { %v3111_v32 = vsub.f32 %v2901_v9, %v1272_v8  ;;  %v3114_v57 = vsub.f32 %v2904_v11, %v1272_v8  ;;  %v3117_v0 = vsub.f32 %v2912_v18, %v1272_v8  ;;  %v3120_v62 = vsub.f32 %v2920_v21, %v1272_v8 }
 0x33f   : > { %v1277_v12 = vpop.xlane.xlu0 %1276 }
 0x340   : > { %v1385_v35 = vmul.f32 1.442695, %v3111_v32  ;;  %v1387_v45 = vmul.f32 1.442695, %v3114_v57  ;;  %v1389_v51 = vmul.f32 1.442695, %v3117_v0  ;;  %v3126_v55 = vsub.f32 %v2909_v15, %v1277_v12 }
 0x341   : > { %v1391_v9 = vmul.f32 1.442695, %v3120_v62  ;;  %v3130_v11 = vsub.f32 %v2917_v20, %v1277_v12  ;;  %v3133_v18 = vsub.f32 %v2923_v22, %v1277_v12  ;;  %v3136_v21 = vsub.f32 %v2929_v25, %v1277_v12 }
 0x342   : > { %2325 = vpow2.f32 %v1385_v35  ;;  %v1393_v52 = vmul.f32 1.442695, %v3126_v55 }
 0x343   : > { %2327 = vpow2.f32 %v1387_v45  ;;  %v1395_v7 = vmul.f32 1.442695, %v3130_v11  ;;  %v1397_v15 = vmul.f32 1.442695, %v3133_v18  ;;  %v1399_v61 = vmul.f32 1.442695, %v3136_v21 }
 0x344   : > { %2329 = vpow2.f32 %v1389_v51 }
 0x345   : > { %2331 = vpow2.f32 %v1391_v9  ;;  %v1282_v20 = vpop.xlane.xlu0 %1281 }
 0x346   : > { %2333 = vpow2.f32 %v1393_v52  ;;  %v3143_v22 = vsub.f32 %v2934_v30, %v1282_v20  ;;  %v3146_v25 = vsub.f32 %v2937_v33, %v1282_v20  ;;  %v3149_v26 = vsub.f32 %v2944_v40, %v1282_v20 }
 0x347   : > { %2335 = vpow2.f32 %v1395_v7  ;;  %v3152_v5 = vsub.f32 %v2952_v43, %v1282_v20  ;;  %v1287_v28 = vpop.xlane.xlu1 %1286 }
 0x348   : > { %2337 = vpow2.f32 %v1397_v15  ;;  %v1401_v8 = vmul.f32 1.442695, %v3143_v22  ;;  %v1403_v12 = vmul.f32 1.442695, %v3146_v25  ;;  %v1405_v35 = vmul.f32 1.442695, %v3149_v26 }
 0x349   : > { %2339 = vpow2.f32 %v1399_v61  ;;  %v1407_v30 = vmul.f32 1.442695, %v3152_v5  ;;  %v3159_v33 = vsub.f32 %v2941_v37, %v1287_v28  ;;  %v3162_v40 = vsub.f32 %v2949_v42, %v1287_v28 }
 0x34a   : > { %2341 = vpow2.f32 %v1401_v8  ;;  %v3165_v43 = vsub.f32 %v2955_v44, %v1287_v28  ;;  %v3168_v45 = vsub.f32 %v2961_v47, %v1287_v28 }
 0x34b   : > { %2343 = vpow2.f32 %v1403_v12  ;;  %v1409_v51 = vmul.f32 1.442695, %v3159_v33  ;;  %v1411_v9 = vmul.f32 1.442695, %v3162_v40 }
 0x34c   : > { %3515 = vst [vmem:[#allocation15_spill] sm:$0xff] %v3165_v43  ;;  %3516 = vst [vmem:[#allocation16_spill] sm:$0xff] %v3168_v45  ;;  %v2326_v52 = vpop.eup %2325  ;;  %2345 = vpow2.f32 %v1405_v35  ;;  %v1413_v37 = vmul.f32 1.442695, %v3165_v43  ;;  %v1415_v42 = vmul.f32 1.442695, %v3168_v45 }
 0x34d   : > { %v2328_v7 = vpop.eup %2327  ;;  %2347 = vpow2.f32 %v1407_v30  ;;  %v1292_v15 = vpop.xlane.xlu0 %1291 }
 0x34e   : > { %v2330_v61 = vpop.eup %2329  ;;  %2349 = vpow2.f32 %v1409_v51  ;;  %v3175_v44 = vsub.f32 %v2966_v53, %v1292_v15  ;;  %v3178_v47 = vsub.f32 %v2969_v56, %v1292_v15  ;;  %v3181_v20 = vsub.f32 %v2976_v63, %v1292_v15 }
 0x34f   : > { %v2332_v28 = vpop.eup %2331  ;;  %2351 = vpow2.f32 %v1411_v9  ;;  %v3184_v8 = vsub.f32 %v2984_v3, %v1292_v15  ;;  %v1297_v12 = vpop.xlane.xlu1 %1296  ;;  %v1489_v35 = vadd.f32 %v2328_v7, %v2326_v52 }
 0x350   : > { %3517 = vst [vmem:[#allocation17_spill] sm:$0xff] %v3175_v44  ;;  %3518 = vst [vmem:[#allocation18_spill] sm:$0xff] %v3178_v47  ;;  %v2334_v30 = vpop.eup %2333  ;;  %2353 = vpow2.f32 %v1413_v37  ;;  %v1417_v51 = vmul.f32 1.442695, %v3175_v44  ;;  %v1419_v53 = vmul.f32 1.442695, %v3178_v47  ;;  %v3191_v43 = vsub.f32 %v2973_v60, %v1297_v12 }
 0x351   : > { %3519 = vst [vmem:[#allocation19_spill] sm:$0xff] %v3181_v20  ;;  %3520 = vst [vmem:[#allocation20_spill] sm:$0xff] %v3184_v8  ;;  %v1421_v45 = vmul.f32 1.442695, %v3181_v20  ;;  %v2336_v56 = vpop.eup %2335  ;;  %2355 = vpow2.f32 %v1415_v42  ;;  %v1423_v63 = vmul.f32 1.442695, %v3184_v8  ;;  %v3194_v3 = vsub.f32 %v2981_v2, %v1297_v12 }
 0x352   : > { %v2338_v9 = vpop.eup %2337  ;;  %2357 = vpow2.f32 %v1417_v51  ;;  %v3197_v52 = vsub.f32 %v2987_v6, %v1297_v12  ;;  %v3200_v37 = vsub.f32 %v2993_v49, %v1297_v12  ;;  %v1490_v7 = vadd.f32 %v2330_v61, %v1489_v35 }
 0x353   : > { %v2340_v15 = vpop.eup %2339  ;;  %2359 = vpow2.f32 %v1419_v53  ;;  %v1425_v42 = vmul.f32 1.442695, %v3191_v43  ;;  %v1427_v8 = vmul.f32 1.442695, %v3194_v3  ;;  %v1494_v60 = vadd.f32 %v2336_v56, %v2334_v30 }
 0x354   : > { %v2342_v20 = vpop.eup %2341  ;;  %2361 = vpow2.f32 %v1421_v45  ;;  %v1429_v2 = vmul.f32 1.442695, %v3197_v52  ;;  %v1491_v47 = vadd.f32 %v2332_v28, %v1490_v7  ;;  %v1431_v6 = vmul.f32 1.442695, %v3200_v37 }
 0x355   : > { %v2344_v51 = vpop.eup %2343  ;;  %2363 = vpow2.f32 %v1423_v63  ;;  %v1302_v44 = vpop.xlane.xlu0 %1301  ;;  %v1495_v49 = vadd.f32 %v2338_v9, %v1494_v60 }
 0x356   : > { %v2346_v12 = vpop.eup %2345  ;;  %2365 = vpow2.f32 %v1425_v42  ;;  %1492 = vadd.xlane.f32.xlu1 %v1491_v47  ;;  %v3207_v61 = vsub.f32 %v2998_v17, %v1302_v44  ;;  %v3210_v35 = vsub.f32 %v3001_v24, %v1302_v44  ;;  %v3213_v45 = vsub.f32 %v3008_v34, %v1302_v44 }
 0x357   : > { %v2348_v30 = vpop.eup %2347  ;;  %2367 = vpow2.f32 %v1427_v8  ;;  %v3216_v28 = vsub.f32 %v3016_v38, %v1302_v44  ;;  %v1496_v53 = vadd.f32 %v2340_v15, %v1495_v49  ;;  %v1307_v56 = vpop.xlane.xlu1 %1306  ;;  %v1499_v63 = vadd.f32 %v2344_v51, %v2342_v20 }
 0x358   : > { %v2350_v9 = vpop.eup %2349  ;;  %2369 = vpow2.f32 %v1429_v2  ;;  %v1433_v47 = vmul.f32 1.442695, %v3207_v61  ;;  %v1435_v17 = vmul.f32 1.442695, %v3210_v35  ;;  %v1437_v24 = vmul.f32 1.442695, %v3213_v45 }
 0x359   : > { %v2352_v7 = vpop.eup %2351  ;;  %2371 = vpow2.f32 %v1431_v6  ;;  %v1439_v34 = vmul.f32 1.442695, %v3216_v28  ;;  %1497 = vadd.xlane.f32.xlu0 %v1496_v53  ;;  %v3223_v8 = vsub.f32 %v3005_v29, %v1307_v56  ;;  %v3226_v38 = vsub.f32 %v3013_v36, %v1307_v56 }
 0x35a   : > { %v2354_v44 = vpop.eup %2353  ;;  %2373 = vpow2.f32 %v1433_v47  ;;  %v3229_v20 = vsub.f32 %v3019_v39, %v1307_v56  ;;  %v3232_v15 = vsub.f32 %v3025_v46, %v1307_v56  ;;  %v1500_v42 = vadd.f32 %v2346_v12, %v1499_v63 }
 0x35b   : > { %v2356_v60 = vpop.eup %2355  ;;  %2375 = vpow2.f32 %v1435_v17  ;;  %v1441_v2 = vmul.f32 1.442695, %v3223_v8  ;;  %v1443_v51 = vmul.f32 1.442695, %v3226_v38  ;;  %v1504_v29 = vadd.f32 %v2352_v7, %v2350_v9 }
 0x35c   : > { %v2358_v6 = vpop.eup %2357  ;;  %2377 = vpow2.f32 %v1437_v24  ;;  %v1445_v36 = vmul.f32 1.442695, %v3229_v20  ;;  %v1501_v49 = vadd.f32 %v2348_v30, %v1500_v42  ;;  %v1447_v39 = vmul.f32 1.442695, %v3232_v15 }
 0x35d   : > { %v2360_v53 = vpop.eup %2359  ;;  %2379 = vpow2.f32 %v1439_v34  ;;  %v1312_v47 = vpop.xlane.xlu0 %1311  ;;  %v1505_v46 = vadd.f32 %v2354_v44, %v1504_v29 }
 0x35e   : > { %v2362_v56 = vpop.eup %2361  ;;  %2381 = vpow2.f32 %v1441_v2  ;;  %1502 = vadd.xlane.f32.xlu1 %v1501_v49  ;;  %v3239_v12 = vsub.f32 %v3030_v54, %v1312_v47  ;;  %v3242_v63 = vsub.f32 %v3033_v58, %v1312_v47  ;;  %v3245_v9 = vsub.f32 %v3040_v10, %v1312_v47 }
 0x35f   : > { %v2364_v17 = vpop.eup %2363  ;;  %2383 = vpow2.f32 %v1443_v51  ;;  %v3248_v30 = vsub.f32 %v3048_v16, %v1312_v47  ;;  %v1506_v24 = vadd.f32 %v2356_v60, %v1505_v46  ;;  %v1317_v7 = vpop.xlane.xlu1 %1316  ;;  %v1509_v34 = vadd.f32 %v2360_v53, %v2358_v6 }
 0x360   : > { %v2366_v44 = vpop.eup %2365  ;;  %2385 = vpow2.f32 %v1445_v36  ;;  %v1449_v42 = vmul.f32 1.442695, %v3239_v12  ;;  %v1451_v54 = vmul.f32 1.442695, %v3242_v63  ;;  %v1453_v58 = vmul.f32 1.442695, %v3245_v9 }
 0x361   : > { %v2368_v2 = vpop.eup %2367  ;;  %2387 = vpow2.f32 %v1447_v39  ;;  %v1455_v10 = vmul.f32 1.442695, %v3248_v30  ;;  %1507 = vadd.xlane.f32.xlu0 %v1506_v24  ;;  %v3255_v51 = vsub.f32 %v3037_v1, %v1317_v7  ;;  %v3258_v16 = vsub.f32 %v3045_v14, %v1317_v7 }
 0x362   : > { %v2370_v60 = vpop.eup %2369  ;;  %2389 = vpow2.f32 %v1449_v42  ;;  %v3261_v29 = vsub.f32 %v3051_v19, %v1317_v7  ;;  %v3264_v6 = vsub.f32 %v3057_v27, %v1317_v7  ;;  %v1510_v36 = vadd.f32 %v2362_v56, %v1509_v34  ;;  %v3522_v34 = vld [vmem:[#allocation11_spill] sm:$0xff] }
 0x363   : > { %v2372_v49 = vpop.eup %2371  ;;  %2391 = vpow2.f32 %v1451_v54  ;;  %v1457_v53 = vmul.f32 1.442695, %v3255_v51  ;;  %v1459_v39 = vmul.f32 1.442695, %v3258_v16  ;;  %v1514_v1 = vadd.f32 %v2368_v2, %v2366_v44  ;;  %v3524_v44 = vld [vmem:[#allocation13_spill] sm:$0xff] }
 0x364   : > { %3521 = vst [vmem:[#allocation21_spill] sm:$0xff] %v3264_v6  ;;  %v2374_v47 = vpop.eup %2373  ;;  %2393 = vpow2.f32 %v1453_v58  ;;  %v1461_v14 = vmul.f32 1.442695, %v3261_v29  ;;  %v1511_v46 = vadd.f32 %v2364_v17, %v1510_v36  ;;  %v1463_v19 = vmul.f32 1.442695, %v3264_v6 }
 0x365   : > { %v2376_v24 = vpop.eup %2375  ;;  %2395 = vpow2.f32 %v1455_v10  ;;  %v1322_v42 = vpop.xlane.xlu0 %1321  ;;  %v1515_v27 = vadd.f32 %v2370_v60, %v1514_v1 }
 0x366   : > { %v2378_v7 = vpop.eup %2377  ;;  %2397 = vpow2.f32 %v1457_v53  ;;  %1512 = vadd.xlane.f32.xlu1 %v1511_v46  ;;  %v3271_v56 = vsub.f32 %v3062_v41, %v1322_v42  ;;  %v3274_v54 = vsub.f32 %v3522_v34, %v1322_v42  ;;  %v3277_v58 = vsub.f32 %v3524_v44, %v1322_v42 }
 0x367   : > { %v2380_v2 = vpop.eup %2379  ;;  %2399 = vpow2.f32 %v1459_v39  ;;  %v3280_v17 = vsub.f32 %v3080_v13, %v1322_v42  ;;  %v1516_v10 = vadd.f32 %v2372_v49, %v1515_v27  ;;  %v1327_v36 = vpop.xlane.xlu1 %1326  ;;  %v1519_v60 = vadd.f32 %v2376_v24, %v2374_v47  ;;  %v3527_v39 = vld [vmem:[#allocation12_spill] sm:$0xff]  ;;  %v3528_v13 = vld [vmem:[#allocation14_spill] sm:$0xff] }
 0x368   : > { %3523 = vst [vmem:[#allocation11_spill] sm:$0xff] %v3274_v54  ;;  %3525 = vst [vmem:[#allocation13_spill] sm:$0xff] %v3277_v58  ;;  %v2382_v1 = vpop.eup %2381  ;;  %2401 = vpow2.f32 %v1461_v14  ;;  %v1465_v53 = vmul.f32 1.442695, %v3271_v56  ;;  %v1467_v41 = vmul.f32 1.442695, %v3274_v54  ;;  %v3287_v6 = vsub.f32 %v3527_v39, %v1327_v36 }
 0x369   : > { %3526 = vst [vmem:[#allocation22_spill] sm:$0xff] %v3280_v17  ;;  %v1469_v46 = vmul.f32 1.442695, %v3277_v58  ;;  %v2384_v34 = vpop.eup %2383  ;;  %2403 = vpow2.f32 %v1463_v19  ;;  %v1471_v44 = vmul.f32 1.442695, %v3280_v17  ;;  %1517 = vadd.xlane.f32.xlu0 %v1516_v10  ;;  %v3290_v49 = vsub.f32 %v3528_v13, %v1327_v36 }
 0x36a   : > { %v2386_v47 = vpop.eup %2385  ;;  %2405 = vpow2.f32 %v1465_v53  ;;  %v3293_v14 = vsub.f32 %v3083_v23, %v1327_v36  ;;  %v3296_v24 = vsub.f32 %v3089_v31, %v1327_v36  ;;  %v1520_v42 = vadd.f32 %v2378_v7, %v1519_v60 }
 0x36b   : > { %v2388_v27 = vpop.eup %2387  ;;  %2407 = vpow2.f32 %v1467_v41  ;;  %v1473_v19 = vmul.f32 1.442695, %v3287_v6  ;;  %v1475_v10 = vmul.f32 1.442695, %v3290_v49  ;;  %v1524_v39 = vadd.f32 %v2384_v34, %v2382_v1 }
 0x36c   : > { %v2390_v17 = vpop.eup %2389  ;;  %2409 = vpow2.f32 %v1469_v46  ;;  %v1477_v13 = vmul.f32 1.442695, %v3293_v14  ;;  %v1521_v58 = vadd.f32 %v2380_v2, %v1520_v42  ;;  %v1479_v23 = vmul.f32 1.442695, %v3296_v24 }
 0x36d   : > { %v2392_v53 = vpop.eup %2391  ;;  %2411 = vpow2.f32 %v1471_v44  ;;  %v1525_v54 = vadd.f32 %v2386_v47, %v1524_v39  ;;  %v1332_v31 = vpop.xlane.xlu0 %1331 }
 0x36e   : > { %v2394_v36 = vpop.eup %2393  ;;  %2413 = vpow2.f32 %v1473_v19  ;;  %1522 = vadd.xlane.f32.xlu1 %v1521_v58  ;;  %v3303_v7 = vsub.f32 %v3094_v48, %v1332_v31  ;;  %v3306_v60 = vsub.f32 %v3097_v59, %v1332_v31  ;;  %v3309_v1 = vsub.f32 %v3101_v50, %v1332_v31 }
 0x36f   : > { %v2396_v41 = vpop.eup %2395  ;;  %2415 = vpow2.f32 %v1475_v10  ;;  %v1526_v2 = vadd.f32 %v2388_v27, %v1525_v54  ;;  %v3312_v46 = vsub.f32 %v3106_v4, %v1332_v31  ;;  %v1529_v34 = vadd.f32 %v2392_v53, %v2390_v17 }
 0x370   : > { %v2398_v44 = vpop.eup %2397  ;;  %2417 = vpow2.f32 %v1477_v13  ;;  %v1481_v58 = vmul.f32 1.442695, %v3303_v7  ;;  %v1483_v48 = vmul.f32 1.442695, %v3306_v60  ;;  %v1485_v59 = vmul.f32 1.442695, %v3309_v1 }
 0x371   : > { %3529 = vst [vmem:[#allocation12_spill] sm:$0xff] %v3312_v46  ;;  %v2400_v47 = vpop.eup %2399  ;;  %2419 = vpow2.f32 %v1479_v23  ;;  %1527 = vadd.xlane.f32.xlu0 %v1526_v2  ;;  %v1530_v50 = vadd.f32 %v2394_v36, %v1529_v34  ;;  %v1487_v4 = vmul.f32 1.442695, %v3312_v46 }
 0x372   : > { %v2402_v42 = vpop.eup %2401  ;;  %2421 = vpow2.f32 %v1481_v58  ;;  %v1534_v19 = vadd.f32 %v2400_v47, %v2398_v44 }
 0x373   : > { %v2404_v54 = vpop.eup %2403  ;;  %2423 = vpow2.f32 %v1483_v48  ;;  %v1531_v17 = vadd.f32 %v2396_v41, %v1530_v50 }
 0x374   : > { %v2406_v27 = vpop.eup %2405  ;;  %v1535_v10 = vadd.f32 %v2402_v42, %v1534_v19  ;;  %2425 = vpow2.f32 %v1485_v59 }
 0x375   : > { %v2408_v39 = vpop.eup %2407  ;;  %1532 = vadd.xlane.f32.xlu1 %v1531_v17  ;;  %2427 = vpow2.f32 %v1487_v4 }
 0x376   : > { %v2410_v13 = vpop.eup %2409  ;;  %v1536_v53 = vadd.f32 %v2404_v54, %v1535_v10  ;;  %v1539_v23 = vadd.f32 %v2408_v39, %v2406_v27 }
 0x377   : > { %v2412_v31 = vpop.eup %2411 }
 0x378   : > { %v2414_v2 = vpop.eup %2413  ;;  %1537 = vadd.xlane.f32.xlu0 %v1536_v53  ;;  %v1540_v36 = vadd.f32 %v2410_v13, %v1539_v23 }
 0x379   : > { %v2416_v34 = vpop.eup %2415 }
 0x37a   : > { %v2418_v44 = vpop.eup %2417  ;;  %v1541_v58 = vadd.f32 %v2412_v31, %v1540_v36  ;;  %v1544_v48 = vadd.f32 %v2416_v34, %v2414_v2 }
 0x37b   : > { %v2420_v47 = vpop.eup %2419 }
 0x37c   : > { %v2422_v46 = vpop.eup %2421  ;;  %1542 = vadd.xlane.f32.xlu1 %v1541_v58  ;;  %v1545_v41 = vadd.f32 %v2418_v44, %v1544_v48 }
 0x37d   : > { %v2424_v59 = vpop.eup %2423 }
 0x37e   : > { %v1546_v50 = vadd.f32 %v2420_v47, %v1545_v41  ;;  %v1549_v42 = vadd.f32 %v2424_v59, %v2422_v46  ;;  %v2426_v19 = vpop.eup %2425 }
 0x37f   : > { %v2428_v4 = vpop.eup %2427 }
 0x380   : > { %1547 = vadd.xlane.f32.xlu0 %v1546_v50  ;;  %v1550_v54 = vadd.f32 %v2426_v19, %v1549_v42 }
 0x382   : > { %v1551_v17 = vadd.f32 %v2428_v4, %v1550_v54 }
 0x384   : > { %1552 = vadd.xlane.f32.xlu1 %v1551_v17  ;;  %v3531_v17 = vld [vmem:[#allocation16_spill] sm:$0xff] }
 0x3e3   : > { %v1493_v27 = vpop.xlane.xlu1 %1492 }
 0x3e4   : > { %2429 = vlog2.f32 %v1493_v27 }
 0x3e6   : > { %v1498_v10 = vpop.xlane.xlu0 %1497 }
 0x3e7   : > { %2431 = vlog2.f32 %v1498_v10  ;;  %v3532_v10 = vld [vmem:[#allocation17_spill] sm:$0xff] }
 0x3eb   : > { %v1503_v39 = vpop.xlane.xlu1 %1502 }
 0x3ec   : > { %2433 = vlog2.f32 %v1503_v39  ;;  %v3533_v39 = vld [vmem:[#allocation18_spill] sm:$0xff] }
 0x3ee   : > { %v2430_v13 = vpop.eup %2429  ;;  %v1508_v53 = vpop.xlane.xlu0 %1507 }
 0x3ef   : > { %v1555_v23 = vmul.f32 0.6931472, %v2430_v13  ;;  %2435 = vlog2.f32 %v1508_v53  ;;  %v3534_v53 = vld [vmem:[#allocation19_spill] sm:$0xff] }
 0x3f1   : > { %v2432_v46 = vpop.eup %2431  ;;  %v1580_v31 = vsub.f32 %v3111_v32, %v1555_v23  ;;  %v1581_v2 = vsub.f32 %v3114_v57, %v1555_v23  ;;  %v1582_v36 = vsub.f32 %v3117_v0, %v1555_v23  ;;  %v1583_v34 = vsub.f32 %v3120_v62, %v1555_v23 }
 0x3f2   : > { %v1557_v44 = vmul.f32 0.6931472, %v2432_v46  ;;  %v3535_v46 = vld [vmem:[#allocation20_spill] sm:$0xff] }
 0x3f3   : > { %1632 = vst [vmem:[%s3325_s10] sm:$0xff] %v1580_v31  ;;  %1633 = vst [vmem:[%s3325_s10 + $0x8] sm:$0xff] %v1581_v2  ;;  %v1513_v32 = vpop.xlane.xlu1 %1512 }
 0x3f4   : > { %1634 = vst [vmem:[%s3325_s10 + $0x10] sm:$0xff] %v1582_v36  ;;  %1635 = vst [vmem:[%s3325_s10 + $0x18] sm:$0xff] %v1583_v34  ;;  %v1584_v57 = vsub.f32 %v3126_v55, %v1557_v44  ;;  %v1585_v0 = vsub.f32 %v3130_v11, %v1557_v44  ;;  %v1586_v62 = vsub.f32 %v3133_v18, %v1557_v44  ;;  %2437 = vlog2.f32 %v1513_v32 }
 0x3f5   : > { %v1587_v58 = vsub.f32 %v3136_v21, %v1557_v44 }
 0x3f6   : > { %v2434_v48 = vpop.eup %2433  ;;  %1636 = vst [vmem:[%s3325_s10 + $0x20] sm:$0xff] %v1584_v57  ;;  %1637 = vst [vmem:[%s3325_s10 + $0x28] sm:$0xff] %v1585_v0  ;;  %v1518_v47 = vpop.xlane.xlu0 %1517 }
 0x3f7   : > { %1638 = vst [vmem:[%s3325_s10 + $0x30] sm:$0xff] %v1586_v62  ;;  %1639 = vst [vmem:[%s3325_s10 + $0x38] sm:$0xff] %v1587_v58  ;;  %v1559_v41 = vmul.f32 0.6931472, %v2434_v48  ;;  %2439 = vlog2.f32 %v1518_v47 }
 0x3f9   : > { %v2436_v55 = vpop.eup %2435  ;;  %v1588_v11 = vsub.f32 %v3143_v22, %v1559_v41  ;;  %v1589_v18 = vsub.f32 %v3146_v25, %v1559_v41  ;;  %v1590_v21 = vsub.f32 %v3149_v26, %v1559_v41  ;;  %v1591_v59 = vsub.f32 %v3152_v5, %v1559_v41  ;;  %v3530_v22 = vld [vmem:[#allocation15_spill] sm:$0xff] }
 0x3fa   : > { %v1561_v50 = vmul.f32 0.6931472, %v2436_v55 }
 0x3fb   : > { %1640 = vst [vmem:[%s3325_s10 + $0x40] sm:$0xff] %v1588_v11  ;;  %1641 = vst [vmem:[%s3325_s10 + $0x48] sm:$0xff] %v1589_v18  ;;  %v1523_v42 = vpop.xlane.xlu1 %1522 }
 0x3fc   : > { %1642 = vst [vmem:[%s3325_s10 + $0x50] sm:$0xff] %v1590_v21  ;;  %1643 = vst [vmem:[%s3325_s10 + $0x58] sm:$0xff] %v1591_v59  ;;  %v1592_v19 = vsub.f32 %v3159_v33, %v1561_v50  ;;  %v1593_v54 = vsub.f32 %v3162_v40, %v1561_v50  ;;  %v1594_v4 = vsub.f32 %v3530_v22, %v1561_v50  ;;  %2441 = vlog2.f32 %v1523_v42 }
 0x3fd   : > { %v1595_v25 = vsub.f32 %v3531_v17, %v1561_v50  ;;  %v3538_v17 = vld [vmem:[#allocation13_spill] sm:$0xff] }
 0x3fe   : > { %1644 = vst [vmem:[%s3325_s10 + $0x60] sm:$0xff] %v1592_v19  ;;  %1645 = vst [vmem:[%s3325_s10 + $0x68] sm:$0xff] %v1593_v54  ;;  %v1528_v26 = vpop.xlane.xlu0 %1527  ;;  %v2438_v5 = vpop.eup %2437 }
 0x3ff   : > { %1646 = vst [vmem:[%s3325_s10 + $0x70] sm:$0xff] %v1594_v4  ;;  %1647 = vst [vmem:[%s3325_s10 + $0x78] sm:$0xff] %v1595_v25  ;;  %2443 = vlog2.f32 %v1528_v26  ;;  %v1563_v27 = vmul.f32 0.6931472, %v2438_v5  ;;  %v3537_v4 = vld [vmem:[#allocation11_spill] sm:$0xff]  ;;  %v3539_v25 = vld [vmem:[#allocation22_spill] sm:$0xff] }
 0x401   : > { %v2440_v33 = vpop.eup %2439  ;;  %v1596_v40 = vsub.f32 %v3532_v10, %v1563_v27  ;;  %v1597_v13 = vsub.f32 %v3533_v39, %v1563_v27  ;;  %v1598_v23 = vsub.f32 %v3534_v53, %v1563_v27  ;;  %v1599_v31 = vsub.f32 %v3535_v46, %v1563_v27 }
 0x402   : > { %v1533_v2 = vpop.xlane.xlu1 %1532  ;;  %v1565_v36 = vmul.f32 0.6931472, %v2440_v33 }
 0x403   : > { %2445 = vlog2.f32 %v1533_v2  ;;  %1648 = vst [vmem:[%s3325_s10 + $0x80] sm:$0xff] %v1596_v40  ;;  %1649 = vst [vmem:[%s3325_s10 + $0x88] sm:$0xff] %v1597_v13 }
 0x404   : > { %1650 = vst [vmem:[%s3325_s10 + $0x90] sm:$0xff] %v1598_v23  ;;  %1651 = vst [vmem:[%s3325_s10 + $0x98] sm:$0xff] %v1599_v31  ;;  %v1600_v34 = vsub.f32 %v3191_v43, %v1565_v36  ;;  %v1601_v44 = vsub.f32 %v3194_v3, %v1565_v36  ;;  %v1602_v32 = vsub.f32 %v3197_v52, %v1565_v36 }
 0x405   : > { %v1603_v57 = vsub.f32 %v3200_v37, %v1565_v36  ;;  %v1538_v0 = vpop.xlane.xlu0 %1537 }
 0x406   : > { %2447 = vlog2.f32 %v1538_v0  ;;  %v2442_v62 = vpop.eup %2441  ;;  %1652 = vst [vmem:[%s3325_s10 + $0xa0] sm:$0xff] %v1600_v34  ;;  %1653 = vst [vmem:[%s3325_s10 + $0xa8] sm:$0xff] %v1601_v44 }
 0x407   : > { %1654 = vst [vmem:[%s3325_s10 + $0xb0] sm:$0xff] %v1602_v32  ;;  %1655 = vst [vmem:[%s3325_s10 + $0xb8] sm:$0xff] %v1603_v57  ;;  %v1567_v58 = vmul.f32 0.6931472, %v2442_v62 }
 0x409   : > { %v2444_v48 = vpop.eup %2443  ;;  %v1543_v43 = vpop.xlane.xlu1 %1542  ;;  %v1604_v3 = vsub.f32 %v3207_v61, %v1567_v58  ;;  %v1605_v52 = vsub.f32 %v3210_v35, %v1567_v58  ;;  %v1606_v37 = vsub.f32 %v3213_v45, %v1567_v58  ;;  %v1607_v47 = vsub.f32 %v3216_v28, %v1567_v58 }
 0x40a   : > { %v1569_v41 = vmul.f32 0.6931472, %v2444_v48  ;;  %2449 = vlog2.f32 %v1543_v43 }
 0x40b   : > { %1656 = vst [vmem:[%s3325_s10 + $0xc0] sm:$0xff] %v1604_v3  ;;  %1657 = vst [vmem:[%s3325_s10 + $0xc8] sm:$0xff] %v1605_v52 }
 0x40c   : > { %1658 = vst [vmem:[%s3325_s10 + $0xd0] sm:$0xff] %v1606_v37  ;;  %1659 = vst [vmem:[%s3325_s10 + $0xd8] sm:$0xff] %v1607_v47  ;;  %v1608_v11 = vsub.f32 %v3223_v8, %v1569_v41  ;;  %v1609_v61 = vsub.f32 %v3226_v38, %v1569_v41  ;;  %v1610_v35 = vsub.f32 %v3229_v20, %v1569_v41 }
 0x40d   : > { %v2446_v55 = vpop.eup %2445  ;;  %v1611_v45 = vsub.f32 %v3232_v15, %v1569_v41  ;;  %v1548_v28 = vpop.xlane.xlu0 %1547 }
 0x40e   : > { %v1571_v18 = vmul.f32 0.6931472, %v2446_v55  ;;  %2451 = vlog2.f32 %v1548_v28  ;;  %1660 = vst [vmem:[%s3325_s10 + $0xe0] sm:$0xff] %v1608_v11  ;;  %1661 = vst [vmem:[%s3325_s10 + $0xe8] sm:$0xff] %v1609_v61 }
 0x40f   : > { %1662 = vst [vmem:[%s3325_s10 + $0xf0] sm:$0xff] %v1610_v35  ;;  %1663 = vst [vmem:[%s3325_s10 + $0xf8] sm:$0xff] %v1611_v45 }
 0x410   : > { %v2448_v21 = vpop.eup %2447  ;;  %v1612_v8 = vsub.f32 %v3239_v12, %v1571_v18  ;;  %v1613_v38 = vsub.f32 %v3242_v63, %v1571_v18  ;;  %v1614_v20 = vsub.f32 %v3245_v9, %v1571_v18  ;;  %v1615_v15 = vsub.f32 %v3248_v30, %v1571_v18  ;;  %v3536_v9 = vld [vmem:[#allocation21_spill] sm:$0xff] }
 0x411   : > { %v1573_v59 = vmul.f32 0.6931472, %v2448_v21  ;;  %v1553_v50 = vpop.xlane.xlu1 %1552 }
 0x412   : > { %1664 = vst [vmem:[%s3325_s10 + $0x100] sm:$0xff] %v1612_v8  ;;  %1665 = vst [vmem:[%s3325_s10 + $0x108] sm:$0xff] %v1613_v38  ;;  %2453 = vlog2.f32 %v1553_v50 }
 0x413   : > { %1666 = vst [vmem:[%s3325_s10 + $0x110] sm:$0xff] %v1614_v20  ;;  %1667 = vst [vmem:[%s3325_s10 + $0x118] sm:$0xff] %v1615_v15  ;;  %v1616_v42 = vsub.f32 %v3255_v51, %v1573_v59  ;;  %v1617_v12 = vsub.f32 %v3258_v16, %v1573_v59  ;;  %v1618_v63 = vsub.f32 %v3261_v29, %v1573_v59 }
 0x414   : > { %v1619_v19 = vsub.f32 %v3536_v9, %v1573_v59  ;;  %v2450_v30 = vpop.eup %2449 }
 0x415   : > { %1668 = vst [vmem:[%s3325_s10 + $0x120] sm:$0xff] %v1616_v42  ;;  %1669 = vst [vmem:[%s3325_s10 + $0x128] sm:$0xff] %v1617_v12  ;;  %v1575_v54 = vmul.f32 0.6931472, %v2450_v30 }
 0x416   : > { %1670 = vst [vmem:[%s3325_s10 + $0x130] sm:$0xff] %v1618_v63  ;;  %1671 = vst [vmem:[%s3325_s10 + $0x138] sm:$0xff] %v1619_v19 }
 0x417   : > { %v1620_v51 = vsub.f32 %v3271_v56, %v1575_v54  ;;  %v1621_v16 = vsub.f32 %v3537_v4, %v1575_v54  ;;  %v1622_v29 = vsub.f32 %v3538_v17, %v1575_v54  ;;  %v1623_v26 = vsub.f32 %v3539_v25, %v1575_v54 }
 0x418   : > { %v2452_v22 = vpop.eup %2451 }
 0x419   : > { %v1577_v5 = vmul.f32 0.6931472, %v2452_v22  ;;  %1672 = vst [vmem:[%s3325_s10 + $0x140] sm:$0xff] %v1620_v51  ;;  %1673 = vst [vmem:[%s3325_s10 + $0x148] sm:$0xff] %v1621_v16 }
 0x41a   : > { %1674 = vst [vmem:[%s3325_s10 + $0x150] sm:$0xff] %v1622_v29  ;;  %1675 = vst [vmem:[%s3325_s10 + $0x158] sm:$0xff] %v1623_v26 }
 0x41b   : > { %v1624_v27 = vsub.f32 %v3287_v6, %v1577_v5  ;;  %v1625_v56 = vsub.f32 %v3290_v49, %v1577_v5  ;;  %v1626_v33 = vsub.f32 %v3293_v14, %v1577_v5  ;;  %v1627_v10 = vsub.f32 %v3296_v24, %v1577_v5  ;;  %v3540_v24 = vld [vmem:[#allocation12_spill] sm:$0xff] }
 0x41c   : > { %v2454_v40 = vpop.eup %2453 }
 0x41d   : > { %1676 = vst [vmem:[%s3325_s10 + $0x160] sm:$0xff] %v1624_v27  ;;  %1677 = vst [vmem:[%s3325_s10 + $0x168] sm:$0xff] %v1625_v56  ;;  %v1579_v39 = vmul.f32 0.6931472, %v2454_v40 }
 0x41e   : > { %1678 = vst [vmem:[%s3325_s10 + $0x170] sm:$0xff] %v1626_v33  ;;  %1679 = vst [vmem:[%s3325_s10 + $0x178] sm:$0xff] %v1627_v10 }
 0x41f   : > { %v1628_v6 = vsub.f32 %v3303_v7, %v1579_v39  ;;  %v1629_v49 = vsub.f32 %v3306_v60, %v1579_v39  ;;  %v1630_v14 = vsub.f32 %v3309_v1, %v1579_v39  ;;  %v1631_v13 = vsub.f32 %v3540_v24, %v1579_v39 }
 0x421   : > { %1680 = vst [vmem:[%s3325_s10 + $0x180] sm:$0xff] %v1628_v6  ;;  %1681 = vst [vmem:[%s3325_s10 + $0x188] sm:$0xff] %v1629_v49 }
 0x422   : > { %1682 = vst [vmem:[%s3325_s10 + $0x190] sm:$0xff] %v1630_v14  ;;  %1683 = vst [vmem:[%s3325_s10 + $0x198] sm:$0xff] %v1631_v13 }
 0x423   : > { %2524 = shalt.err (!%p2521_p11)
}
 0x424   : > { %s2525_s6 = scalar_lea.hbm %s3424_s13, 6656  ;;  %s2529_s5 = scalar_lea.hbm %s3483_s4, 13312 }
 0x425   : > { %p2526_p13 = scmp.ne.s32.totalorder %s3424_s13, %s2525_s6  ;;  %p2530_p6 = scmp.lt.u32.totalorder %s3424_s13, %s3483_s4 }
 0x426   : > { %p2531_p9 = scmp.lt.u32.totalorder %s2529_s5, %s2525_s6  ;;  %p2533_p10 = scmp.lt.u32.totalorder %s2525_s6, %s3424_s13 }
 0x427   : > { %p2527_p0 = pnand %p2526_p13, %p3541_p1 }
 0x428   : > { %p2532_p12 = por %p2531_p9, %p2530_p6 }
 0x429   : > { %p2528_p5 = pneg %p2527_p0 }
 0x42a   : > { %p2534_p2 = por %p2533_p10, %p2532_p12 }
 0x42c   : > { %p2535_p3 = pnand %p2534_p2, %p2528_p5 }
 0x42e   : > { %2538 = shalt.err (!%p2535_p3)
}
 0x42f   : > { %s2592_s9 = smov 512   ;;  %s2593_s10 = smov 32  }
 0x430   : > { %2163 = dma.vmem_to_hbm [thread:$0]  (%p3541_p1), %s3430_s12, 6656, %s3424_s13, %s3438_s14, %s2592_s9, %s2592_s9, %s2593_s10  }
 0x431 PF: > { %p2180_p4 = scmp.ge.s32.totalorder %s2581_s18, 2  ;;  %s1714_s11 = sand.u32 1, %s2569_s15  }
 0x432   : > { %p3542_p7 = scmp.ne.s32.totalorder %s3503_s26, 0  ;;  %s1715_s19 = scalar_lea.sflag [#allocation4], %s1714_s11 }
 0x434   : > { %p2173_p8 = pnand %p2180_p4, %p3542_p7 }
 0x436   : > { %2564 = dma.done.wait (!%p2173_p8), %s1715_s19, 6656  }
 0x437   : > { %2566 = vsyncadd (!%p2173_p8), %s1715_s19, 4294960640  ;;  %p16_p11 = scmp.ge.s32.totalorder %s2644_s21, 4   ;;  %s3543_s15 = smov %s2573_s16 }
 0x438   : > { %s3544_s16 = smov %s2577_s17  ;;  %s3545_s17 = smov %s2655_s24 }
 0x439   : > { %s3546_s18 = smov %s2644_s21  ;;  %18 = sbr.rel (!%p16_p11) target bundleno = 5 (0x5), region = 80 }
 0x440   :  { %1720 = vsyncpa [#allocation3], 1 }
 0x441   :  { %1722 = vsyncpa [#allocation3 + $0x1], 1 }
 0x442   :  { %1723 = vsyncpa [#allocation6], 1 }
 0x443   :  { %1724 = vsyncpa [#allocation4], 1 }
 0x444   :  { %1726 = vsyncpa [#allocation4 + $0x1], 1 }

</bundles_post_ra>
